<compile_context>
chip_gen: v5e
topology: v5e:2x2
jax: 0.10.0
libtpu: 0.0.40
codegen_flags: <defaults>
</compile_context>

<pallas_src>
import functools
import math

import jax
import jax.numpy as jnp
from jax.experimental import pallas as pl
from jax.experimental.pallas import tpu as pltpu

# ----------------------------- configuration --------------------------------
B = 2            # batch
IMG_C = 3        # image channels
IMG_H = 16
IMG_W = 16
PATCH = 8        # patch size for the stand-in visual extractor
D_VF = 128       # visual feature dim (module hardcodes 2048; shrunk for test)
D_MODEL = 64     # transformer width
D_FF = 128       # feed-forward width
NUM_HEADS = 4
DK = D_MODEL // NUM_HEADS
NUM_LAYERS = 2
NUM_CLS = 4      # number of classification heads (args.num_cls)
LN_EPS = 1e-5


# ------------------------------ in-kernel helpers ----------------------------
def _ln(x, g, b, eps):
    """Row-wise LayerNorm over the last dim of a 2-D value."""
    mu = jnp.mean(x, axis=-1, keepdims=True)
    var = jnp.mean((x - mu) ** 2, axis=-1, keepdims=True)
    return (x - mu) * jax.lax.rsqrt(var + eps) * g + b


# ------------------------------ Pallas kernels -------------------------------
def _embed_kernel(patches_ref, vis_w_ref, vis_b_ref, cls_ref,
                  att_w_ref, att_b_ref, o_ref):
    """Per-batch: patch-embed conv (relu) + att_embed (relu); cls row written
    separately (no concat)."""
    att_w = att_w_ref[...]
    att_b = att_b_ref[...]
    p = patches_ref[0].astype(jnp.float32)                        # (N, KP)
    pe = jnp.maximum(
        jnp.dot(p, vis_w_ref[...], preferred_element_type=jnp.float32)
        + vis_b_ref[...], 0.0)                                    # (N, D_VF)
    rows = jnp.maximum(
        jnp.dot(pe, att_w, preferred_element_type=jnp.float32) + att_b, 0.0)
    cls_row = jnp.maximum(
        jnp.dot(cls_ref[...], att_w, preferred_element_type=jnp.float32)
        + att_b, 0.0)                                             # (1, D)
    o_ref[0, 0:1, :] = cls_row.astype(o_ref.dtype)
    o_ref[0, 1:, :] = rows.astype(o_ref.dtype)


def pallas_embed(patches, params):
    b, n, kp = patches.shape
    s = n + 1
    return pl.pallas_call(
        _embed_kernel,
        out_shape=jax.ShapeDtypeStruct((b, s, D_MODEL), jnp.float32),
        grid_spec=pltpu.PrefetchScalarGridSpec(
            num_scalar_prefetch=0,
            grid=(b,),
            in_specs=[
                pl.BlockSpec((1, n, kp), lambda bi: (bi, 0, 0)),
                pl.BlockSpec((kp, D_VF), lambda bi: (0, 0)),
                pl.BlockSpec((1, D_VF), lambda bi: (0, 0)),
                pl.BlockSpec((1, D_VF), lambda bi: (0, 0)),
                pl.BlockSpec((D_VF, D_MODEL), lambda bi: (0, 0)),
                pl.BlockSpec((1, D_MODEL), lambda bi: (0, 0)),
            ],
            out_specs=pl.BlockSpec((1, s, D_MODEL), lambda bi: (bi, 0, 0)),
        ),
        compiler_params=pltpu.CompilerParams(
            dimension_semantics=("parallel",)),
    )(patches, params["vis_w"], params["vis_b"],
      params["cls_token"].reshape(1, D_VF),
      params["att_embed_w"], params["att_embed_b"])


def _encoder_heads_kernel(h0_ref, wqkv_ref, bqkv_ref, wo_ref, w1_ref, b1_ref,
                          w2_ref, vecd_ref, lnf_ref, hweff_ref, hbeff_ref,
                          mem_ref, cls_ref, hstate,
                          *, heads, dk, eps, num_layers):
    """grid = (batch, layer). One pre-norm encoder layer per step; h stays
    resident in VMEM scratch across the layer axis; final LN + mean-pool +
    fused classification heads run on the last layer step."""
    l = pl.program_id(1)

    @pl.when(l == 0)
    def _():
        hstate[...] = h0_ref[0].astype(jnp.float32)

    x = hstate[...]                                              # (S, D)
    s, d = x.shape

    vecd = vecd_ref[0]                                           # (6, D)
    ln1_g, ln1_b = vecd[0:1], vecd[1:2]
    ln2_g, ln2_b = vecd[2:3], vecd[3:4]
    bo, b2 = vecd[4:5], vecd[5:6]

    # ---- self-attention sublayer (1/sqrt(dk) pre-folded into Q weight/bias)
    xn = _ln(x, ln1_g, ln1_b, eps)
    qkv = (jnp.dot(xn, wqkv_ref[0], preferred_element_type=jnp.float32)
           + bqkv_ref[0])                                        # (S, 3D)
    q = jnp.transpose(qkv[:, 0 * d:1 * d].reshape(s, heads, dk), (1, 0, 2))
    k = jnp.transpose(qkv[:, 1 * d:2 * d].reshape(s, heads, dk), (1, 0, 2))
    v = jnp.transpose(qkv[:, 2 * d:3 * d].reshape(s, heads, dk), (1, 0, 2))
    sc = jnp.einsum("hqd,hkd->hqk", q, k,
                    preferred_element_type=jnp.float32)          # (H, S, S)
    sc = sc - jnp.max(sc, axis=-1, keepdims=True)
    e = jnp.exp(sc)
    p = e * pl.reciprocal(jnp.sum(e, axis=-1, keepdims=True), approx=True)
    ctx = jnp.einsum("hqk,hkd->hqd", p, v,
                     preferred_element_type=jnp.float32)         # (H, S, dk)
    att = jnp.transpose(ctx, (1, 0, 2)).reshape(s, d)            # (S, D)
    h1 = jnp.dot(att, wo_ref[0], preferred_element_type=jnp.float32) + bo + x

    # ---- feed-forward sublayer
    xn2 = _ln(h1, ln2_g, ln2_b, eps)
    f = jnp.maximum(
        jnp.dot(xn2, w1_ref[0], preferred_element_type=jnp.float32)
        + b1_ref[0], 0.0)                                        # (S, D_FF)
    h2 = jnp.dot(f, w2_ref[0], preferred_element_type=jnp.float32) + b2 + h1

    hstate[...] = h2

    # ---- final LN + memory.mean(dim=1) + NUM_CLS fused (LN + Linear->1) heads
    @pl.when(l == num_layers - 1)
    def _():
        mem = _ln(h2, lnf_ref[0:1], lnf_ref[1:2], eps)           # (S, D)
        mem_ref[0] = mem.astype(mem_ref.dtype)
        xcls = jnp.mean(mem, axis=0, keepdims=True)              # (1, D)
        mu = jnp.mean(xcls, axis=-1, keepdims=True)
        var = jnp.mean((xcls - mu) ** 2, axis=-1, keepdims=True)
        xhat = (xcls - mu) * jax.lax.rsqrt(var + eps)
        out = (jnp.dot(xhat, hweff_ref[...],
                       preferred_element_type=jnp.float32) + hbeff_ref[...])
        cls_ref[0] = out.astype(cls_ref.dtype)                   # (1, C)


def pallas_encoder_and_heads(h0, pk):
    b, s, d = h0.shape
    num_layers = pk["wqkv"].shape[0]
    c = pk["head_w_eff"].shape[-1]
    kernel = functools.partial(
        _encoder_heads_kernel, heads=NUM_HEADS, dk=DK, eps=LN_EPS,
        num_layers=num_layers)
    return pl.pallas_call(
        kernel,
        out_shape=(jax.ShapeDtypeStruct((b, s, d), jnp.float32),
                   jax.ShapeDtypeStruct((b, 1, c), jnp.float32)),
        grid_spec=pltpu.PrefetchScalarGridSpec(
            num_scalar_prefetch=0,
            grid=(b, num_layers),
            in_specs=[
                pl.BlockSpec((1, s, d), lambda bi, li: (bi, 0, 0)),     # h0
                pl.BlockSpec((1, d, 3 * d), lambda bi, li: (li, 0, 0)),  # wqkv
                pl.BlockSpec((1, 1, 3 * d), lambda bi, li: (li, 0, 0)),  # bqkv
                pl.BlockSpec((1, d, d), lambda bi, li: (li, 0, 0)),      # wo
                pl.BlockSpec((1, d, D_FF), lambda bi, li: (li, 0, 0)),   # w1
                pl.BlockSpec((1, 1, D_FF), lambda bi, li: (li, 0, 0)),   # b1
                pl.BlockSpec((1, D_FF, d), lambda bi, li: (li, 0, 0)),   # w2
                pl.BlockSpec((1, 6, d), lambda bi, li: (li, 0, 0)),      # vec_d
                pl.BlockSpec((2, d), lambda bi, li: (0, 0)),             # ln_f
                pl.BlockSpec((d, c), lambda bi, li: (0, 0)),             # head w
                pl.BlockSpec((1, c), lambda bi, li: (0, 0)),             # head b
            ],
            out_specs=(
                pl.BlockSpec((1, s, d), lambda bi, li: (bi, 0, 0)),      # memory
                pl.BlockSpec((1, 1, c), lambda bi, li: (bi, 0, 0)),      # cls
            ),
            scratch_shapes=[pltpu.VMEM((s, d), jnp.float32)],
        ),
        compiler_params=pltpu.CompilerParams(
            dimension_semantics=("parallel", "arbitrary")),
    )(h0, pk["wqkv"], pk["bqkv"], pk["wo"], pk["w1"], pk["b1"], pk["w2"],
      pk["vec_d"], pk["ln_f"], pk["head_w_eff"], pk["head_b_eff"])


# ------------------------------ parameters -----------------------------------
def init_params(key):
    def w(k, shape, scale=0.02):
        return scale * jax.random.normal(k, shape, dtype=jnp.float32)

    keys = iter(jax.random.split(key, 32))
    params = {
        # stand-in VisualExtractor (patch-embedding conv as matmul)
        "vis_w": w(next(keys), (IMG_C * PATCH * PATCH, D_VF)),
        "vis_b": jnp.zeros((1, D_VF), jnp.float32),
        # cls token (module: nn.Parameter(torch.randn(1, 1, 2048)) -> D_VF here)
        "cls_token": jax.random.normal(next(keys), (1, 1, D_VF), dtype=jnp.float32),
        # Encoder_edit: visual embed d_vf -> d_model
        "att_embed_w": w(next(keys), (D_VF, D_MODEL)),
        "att_embed_b": jnp.zeros((1, D_MODEL), jnp.float32),
        # final encoder LayerNorm
        "ln_f_g": jnp.ones((1, D_MODEL), jnp.float32),
        "ln_f_b": jnp.zeros((1, D_MODEL), jnp.float32),
        # NUM_CLS classification heads, stacked (per-class params as columns)
        "head_ln_g": jnp.ones((D_MODEL, NUM_CLS), jnp.float32),
        "head_ln_b": jnp.zeros((D_MODEL, NUM_CLS), jnp.float32),
        "head_w": w(next(keys), (D_MODEL, NUM_CLS)),
        "head_b": jnp.zeros((1, NUM_CLS), jnp.float32),
    }
    layers = []
    for _ in range(NUM_LAYERS):
        layers.append({
            "ln1_g": jnp.ones((1, D_MODEL), jnp.float32),
            "ln1_b": jnp.zeros((1, D_MODEL), jnp.float32),
            "wqkv": w(next(keys), (D_MODEL, 3 * D_MODEL)),   # fused Q/K/V
            "bqkv": jnp.zeros((1, 3 * D_MODEL), jnp.float32),
            "wo": w(next(keys), (D_MODEL, D_MODEL)),
            "bo": jnp.zeros((1, D_MODEL), jnp.float32),
            "ln2_g": jnp.ones((1, D_MODEL), jnp.float32),
            "ln2_b": jnp.zeros((1, D_MODEL), jnp.float32),
            "w1": w(next(keys), (D_MODEL, D_FF)),
            "b1": jnp.zeros((1, D_FF), jnp.float32),
            "w2": w(next(keys), (D_FF, D_MODEL)),
            "b2": jnp.zeros((1, D_MODEL), jnp.float32),
        })
    params["layers"] = layers
    return params


def _pack_params(params):
    """Stack per-layer weights on a leading layer axis, pack the tiny vectors,
    fold 1/sqrt(dk) into the Q columns, and fold per-class LN affine + Linear
    into a single (D, NUM_CLS) head weight (pure parameter preprocessing)."""
    layers = params["layers"]
    scale = 1.0 / math.sqrt(DK)
    col_scale = jnp.concatenate(
        [jnp.full((D_MODEL,), scale, jnp.float32),
         jnp.ones((2 * D_MODEL,), jnp.float32)])[None, :]         # (1, 3D)
    pk = {
        "wqkv": jnp.stack([lp["wqkv"] * col_scale for lp in layers]),
        "bqkv": jnp.stack([lp["bqkv"] * col_scale for lp in layers]),
        "wo": jnp.stack([lp["wo"] for lp in layers]),
        "w1": jnp.stack([lp["w1"] for lp in layers]),
        "b1": jnp.stack([lp["b1"] for lp in layers]),
        "w2": jnp.stack([lp["w2"] for lp in layers]),
        "vec_d": jnp.stack([
            jnp.concatenate([lp["ln1_g"], lp["ln1_b"], lp["ln2_g"],
                             lp["ln2_b"], lp["bo"], lp["b2"]], axis=0)
            for lp in layers]),                                    # (L, 6, D)
        "ln_f": jnp.concatenate([params["ln_f_g"], params["ln_f_b"]], axis=0),
        # LN_c then Linear_c == xhat @ (w_c * gamma_c) + (beta_c . w_c) + bias_c
        "head_w_eff": params["head_w"] * params["head_ln_g"],       # (D, C)
        "head_b_eff": (jnp.sum(params["head_ln_b"] * params["head_w"],
                               axis=0, keepdims=True) + params["head_b"]),
    }
    return pk


# --------------------------- forward (module graph) ---------------------------
def forward(images, params, targets=None, mode="train"):
    b = images.shape[0]

    # ---- VisualExtractor (stand-in): im2col patch extraction (layout only)
    x = jnp.transpose(images, (0, 2, 3, 1))                    # NCHW -> NHWC
    nh, nw = IMG_H // PATCH, IMG_W // PATCH
    n = nh * nw
    patches = (x.reshape(b, nh, PATCH, nw, PATCH, IMG_C)
                .transpose(0, 1, 3, 2, 4, 5)
                .reshape(b, n, PATCH * PATCH * IMG_C))

    # ---- fused: patch embed (relu) + cls-token row + att_embed (relu)
    # nn.Dropout(0.1) -> identity (eval semantics)
    h0 = pallas_embed(patches, params)                         # (b, n+1, d_model)

    # ---- fused: all encoder layers + final LN + mean-pool + NUM_CLS heads
    packed = _pack_params(params)
    memory, cls_out = pallas_encoder_and_heads(h0, packed)     # (b,S,D),(b,1,C)
    del memory  # used only by the omitted decoders
    cls_out = cls_out[:, 0, :]                                 # (b, NUM_CLS)
    output = [cls_out[:, i:i + 1] for i in range(NUM_CLS)]     # list of (b, 1)

    # TODO(synk): Decoder_only definition not provided in the reference module;
    # the 8 report decoders are omitted and output_list is returned empty.
    output_list = []
    del targets, mode
    return output, output_list


@jax.jit
def forward_jit(images, params):
    return forward(images, params, mode="train")


# ----------------------------------- main -------------------------------------
if __name__ == "__main__":
    root = jax.random.PRNGKey(0)
    pkey, ikey = jax.random.split(root)
    params = init_params(pkey)
    images = jax.random.normal(ikey, (B, IMG_C, IMG_H, IMG_W), dtype=jnp.float32)

    output, output_list = forward_jit(images, params)
    output = jax.block_until_ready(output)

    assert len(output) == NUM_CLS
    for o in output:
        assert o.shape == (B, 1) and o.dtype == jnp.float32
        assert bool(jnp.all(jnp.isfinite(o)))
    assert output_list == []
    print("KERNEL_OK")
</pallas_src>

<mosaic_0001>
module attributes {stable_mosaic.version = 11 : i64} {
  func.func @_embed_kernel(%arg0: i32, %arg1: memref<1x4x192xf32, #tpu.memory_space<vmem>>, %arg2: memref<192x128xf32, #tpu.memory_space<vmem>>, %arg3: memref<1x128xf32, #tpu.memory_space<vmem>>, %arg4: memref<1x128xf32, #tpu.memory_space<vmem>>, %arg5: memref<128x64xf32, #tpu.memory_space<vmem>>, %arg6: memref<1x64xf32, #tpu.memory_space<vmem>>, %arg7: memref<1x5x64xf32, #tpu.memory_space<vmem>>) attributes {dimension_semantics = [#tpu.dimension_semantics<parallel>], iteration_bounds = array<i64: 2>, scalar_prefetch = 0 : i64, scratch_operands = 0 : i64, tpu.core_type = #tpu.core_type<tc>, window_params = [{transform_indices = @transform_0, window_bounds = array<i64: 1, 4, 192>}, {pipeline_mode = #tpu.pipeline_mode<synchronous>, transform_indices = @transform_1, window_bounds = array<i64: 192, 128>}, {pipeline_mode = #tpu.pipeline_mode<synchronous>, transform_indices = @transform_2, window_bounds = array<i64: 1, 128>}, {pipeline_mode = #tpu.pipeline_mode<synchronous>, transform_indices = @transform_3, window_bounds = array<i64: 1, 128>}, {pipeline_mode = #tpu.pipeline_mode<synchronous>, transform_indices = @transform_4, window_bounds = array<i64: 128, 64>}, {pipeline_mode = #tpu.pipeline_mode<synchronous>, transform_indices = @transform_5, window_bounds = array<i64: 1, 64>}, {transform_indices = @transform_6, window_bounds = array<i64: 1, 5, 64>}]} {
    %c0 = arith.constant 0 : index
    %c0_0 = arith.constant 0 : index
    %0 = vector.load %arg5[%c0, %c0_0] : memref<128x64xf32, #tpu.memory_space<vmem>>, vector<128x64xf32>
    %c0_1 = arith.constant 0 : index
    %c0_2 = arith.constant 0 : index
    %1 = vector.load %arg6[%c0_1, %c0_2] : memref<1x64xf32, #tpu.memory_space<vmem>>, vector<1x64xf32>
    %c0_3 = arith.constant 0 : index
    %c0_4 = arith.constant 0 : index
    %c0_5 = arith.constant 0 : index
    %2 = vector.load %arg1[%c0_3, %c0_4, %c0_5] : memref<1x4x192xf32, #tpu.memory_space<vmem>>, vector<1x4x192xf32>
    %3 = vector.shape_cast %2 : vector<1x4x192xf32> to vector<4x192xf32>
    %c0_6 = arith.constant 0 : index
    %c0_7 = arith.constant 0 : index
    %4 = vector.load %arg2[%c0_6, %c0_7] : memref<192x128xf32, #tpu.memory_space<vmem>>, vector<192x128xf32>
    %cst = arith.constant dense<0.000000e+00> : vector<4x128xf32>
    %5 = tpu.matmul %3, %4, %cst {dimension_numbers = #tpu.dot_dimension_numbers<[1], [0], [0], [1], [0, 0, 1, 1], [], []>} : vector<4x192xf32>, vector<192x128xf32>, vector<4x128xf32> -> vector<4x128xf32>
    %c0_8 = arith.constant 0 : index
    %c0_9 = arith.constant 0 : index
    %6 = vector.load %arg3[%c0_8, %c0_9] : memref<1x128xf32, #tpu.memory_space<vmem>>, vector<1x128xf32>
    %7 = vector.broadcast %6 : vector<1x128xf32> to vector<4x128xf32>
    %8 = arith.addf %5, %7 : vector<4x128xf32>
    %cst_10 = arith.constant 0.000000e+00 : f32
    %9 = vector.broadcast %cst_10 : f32 to vector<4x128xf32>
    %10 = arith.maximumf %8, %9 : vector<4x128xf32>
    %cst_11 = arith.constant dense<0.000000e+00> : vector<4x64xf32>
    %11 = tpu.matmul %10, %0, %cst_11 {dimension_numbers = #tpu.dot_dimension_numbers<[1], [0], [0], [1], [0, 0, 1, 1], [], []>} : vector<4x128xf32>, vector<128x64xf32>, vector<4x64xf32> -> vector<4x64xf32>
    %12 = vector.broadcast %1 : vector<1x64xf32> to vector<4x64xf32>
    %13 = arith.addf %11, %12 : vector<4x64xf32>
    %cst_12 = arith.constant 0.000000e+00 : f32
    %14 = vector.broadcast %cst_12 : f32 to vector<4x64xf32>
    %15 = arith.maximumf %13, %14 : vector<4x64xf32>
    %c0_13 = arith.constant 0 : index
    %c0_14 = arith.constant 0 : index
    %16 = vector.load %arg4[%c0_13, %c0_14] : memref<1x128xf32, #tpu.memory_space<vmem>>, vector<1x128xf32>
    %cst_15 = arith.constant dense<0.000000e+00> : vector<1x64xf32>
    %17 = tpu.matmul %16, %0, %cst_15 {dimension_numbers = #tpu.dot_dimension_numbers<[1], [0], [0], [1], [0, 0, 1, 1], [], []>} : vector<1x128xf32>, vector<128x64xf32>, vector<1x64xf32> -> vector<1x64xf32>
    %18 = arith.addf %17, %1 : vector<1x64xf32>
    %cst_16 = arith.constant 0.000000e+00 : f32
    %19 = vector.broadcast %cst_16 : f32 to vector<1x64xf32>
    %20 = arith.maximumf %18, %19 : vector<1x64xf32>
    %c0_17 = arith.constant 0 : index
    %c0_18 = arith.constant 0 : index
    %c0_19 = arith.constant 0 : index
    %21 = vector.load %arg7[%c0_17, %c0_18, %c0_19] : memref<1x5x64xf32, #tpu.memory_space<vmem>>, vector<1x1x64xf32>
    %22 = vector.shape_cast %21 : vector<1x1x64xf32> to vector<1x64xf32>
    %23 = vector.shape_cast %20 : vector<1x64xf32> to vector<1x1x64xf32>
    tpu.vector_store %arg7[%c0_17, %c0_18, %c0_19], %23 {strides = array<i32>} : memref<1x5x64xf32, #tpu.memory_space<vmem>>, vector<1x1x64xf32>,
    %c0_20 = arith.constant 0 : index
    %c1 = arith.constant 1 : index
    %c0_21 = arith.constant 0 : index
    %24 = vector.load %arg7[%c0_20, %c1, %c0_21] : memref<1x5x64xf32, #tpu.memory_space<vmem>>, vector<1x4x64xf32>
    %25 = vector.shape_cast %24 : vector<1x4x64xf32> to vector<4x64xf32>
    %26 = vector.shape_cast %15 : vector<4x64xf32> to vector<1x4x64xf32>
    tpu.vector_store %arg7[%c0_20, %c1, %c0_21], %26 {strides = array<i32>} : memref<1x5x64xf32, #tpu.memory_space<vmem>>, vector<1x4x64xf32>,
    return
  }
  func.func @transform_0(%arg0: i32) -> (i32, i32, i32) {
    %c0_i32 = arith.constant 0 : i32
    %c0_i32_0 = arith.constant 0 : i32
    %c0_i32_1 = arith.constant 0 : i32
    return %arg0, %c0_i32, %c0_i32_0 : i32, i32, i32
  }
  func.func @transform_1(%arg0: i32) -> (i32, i32) {
    %c0_i32 = arith.constant 0 : i32
    %c0_i32_0 = arith.constant 0 : i32
    %c0_i32_1 = arith.constant 0 : i32
    return %c0_i32, %c0_i32_0 : i32, i32
  }
  func.func @transform_2(%arg0: i32) -> (i32, i32) {
    %c0_i32 = arith.constant 0 : i32
    %c0_i32_0 = arith.constant 0 : i32
    %c0_i32_1 = arith.constant 0 : i32
    return %c0_i32, %c0_i32_0 : i32, i32
  }
  func.func @transform_3(%arg0: i32) -> (i32, i32) {
    %c0_i32 = arith.constant 0 : i32
    %c0_i32_0 = arith.constant 0 : i32
    %c0_i32_1 = arith.constant 0 : i32
    return %c0_i32, %c0_i32_0 : i32, i32
  }
  func.func @transform_4(%arg0: i32) -> (i32, i32) {
    %c0_i32 = arith.constant 0 : i32
    %c0_i32_0 = arith.constant 0 : i32
    %c0_i32_1 = arith.constant 0 : i32
    return %c0_i32, %c0_i32_0 : i32, i32
  }
  func.func @transform_5(%arg0: i32) -> (i32, i32) {
    %c0_i32 = arith.constant 0 : i32
    %c0_i32_0 = arith.constant 0 : i32
    %c0_i32_1 = arith.constant 0 : i32
    return %c0_i32, %c0_i32_0 : i32, i32
  }
  func.func @transform_6(%arg0: i32) -> (i32, i32, i32) {
    %c0_i32 = arith.constant 0 : i32
    %c0_i32_0 = arith.constant 0 : i32
    %c0_i32_1 = arith.constant 0 : i32
    return %arg0, %c0_i32, %c0_i32_0 : i32, i32, i32
  }
}

module attributes {stable_mosaic.version = 11 : i64} {
  func.func @_encoder_heads_kernel(%arg0: i32, %arg1: i32, %arg2: memref<1x5x64xf32, #tpu.memory_space<vmem>>, %arg3: memref<1x64x192xf32, #tpu.memory_space<vmem>>, %arg4: memref<1x1x192xf32, #tpu.memory_space<vmem>>, %arg5: memref<1x64x64xf32, #tpu.memory_space<vmem>>, %arg6: memref<1x64x128xf32, #tpu.memory_space<vmem>>, %arg7: memref<1x1x128xf32, #tpu.memory_space<vmem>>, %arg8: memref<1x128x64xf32, #tpu.memory_space<vmem>>, %arg9: memref<1x6x64xf32, #tpu.memory_space<vmem>>, %arg10: memref<2x64xf32, #tpu.memory_space<vmem>>, %arg11: memref<64x4xf32, #tpu.memory_space<vmem>>, %arg12: memref<1x4xf32, #tpu.memory_space<vmem>>, %arg13: memref<1x5x64xf32, #tpu.memory_space<vmem>>, %arg14: memref<1x1x4xf32, #tpu.memory_space<vmem>>, %arg15: memref<5x64xf32, #tpu.memory_space<vmem>>) attributes {dimension_semantics = [#tpu.dimension_semantics<parallel>, #tpu.dimension_semantics<arbitrary>], iteration_bounds = array<i64: 2, 2>, scalar_prefetch = 0 : i64, scratch_operands = 1 : i64, tpu.core_type = #tpu.core_type<tc>, window_params = [{transform_indices = @transform_0, window_bounds = array<i64: 1, 5, 64>}, {transform_indices = @transform_1, window_bounds = array<i64: 1, 64, 192>}, {transform_indices = @transform_2, window_bounds = array<i64: 1, 1, 192>}, {transform_indices = @transform_3, window_bounds = array<i64: 1, 64, 64>}, {transform_indices = @transform_4, window_bounds = array<i64: 1, 64, 128>}, {transform_indices = @transform_5, window_bounds = array<i64: 1, 1, 128>}, {transform_indices = @transform_6, window_bounds = array<i64: 1, 128, 64>}, {transform_indices = @transform_7, window_bounds = array<i64: 1, 6, 64>}, {pipeline_mode = #tpu.pipeline_mode<synchronous>, transform_indices = @transform_8, window_bounds = array<i64: 2, 64>}, {pipeline_mode = #tpu.pipeline_mode<synchronous>, transform_indices = @transform_9, window_bounds = array<i64: 64, 4>}, {pipeline_mode = #tpu.pipeline_mode<synchronous>, transform_indices = @transform_10, window_bounds = array<i64: 1, 4>}, {transform_indices = @transform_11, window_bounds = array<i64: 1, 5, 64>}, {transform_indices = @transform_12, window_bounds = array<i64: 1, 1, 4>}]} {
    %c0_i32 = arith.constant 0 : i32
    %0 = arith.cmpi eq, %arg1, %c0_i32 : i32
    %1 = arith.extui %0 : i1 to i32
    %c0_i32_0 = arith.constant 0 : i32
    %2 = arith.cmpi ne, %1, %c0_i32_0 : i32
    scf.if %2 {
      %c0_44 = arith.constant 0 : index
      %c0_45 = arith.constant 0 : index
      %c0_46 = arith.constant 0 : index
      %111 = vector.load %arg2[%c0_44, %c0_45, %c0_46] : memref<1x5x64xf32, #tpu.memory_space<vmem>>, vector<1x5x64xf32>
      %112 = vector.shape_cast %111 : vector<1x5x64xf32> to vector<5x64xf32>
      %c0_47 = arith.constant 0 : index
      %c0_48 = arith.constant 0 : index
      %113 = vector.load %arg15[%c0_47, %c0_48] : memref<5x64xf32, #tpu.memory_space<vmem>>, vector<5x64xf32>
      tpu.vector_store %arg15[%c0_47, %c0_48], %112 {strides = array<i32>} : memref<5x64xf32, #tpu.memory_space<vmem>>, vector<5x64xf32>,
    } else {
    }
    %c0 = arith.constant 0 : index
    %c0_1 = arith.constant 0 : index
    %3 = vector.load %arg15[%c0, %c0_1] : memref<5x64xf32, #tpu.memory_space<vmem>>, vector<5x64xf32>
    %c0_2 = arith.constant 0 : index
    %c0_3 = arith.constant 0 : index
    %c0_4 = arith.constant 0 : index
    %4 = vector.load %arg9[%c0_2, %c0_3, %c0_4] : memref<1x6x64xf32, #tpu.memory_space<vmem>>, vector<1x6x64xf32>
    %5 = vector.shape_cast %4 : vector<1x6x64xf32> to vector<6x64xf32>
    %6 = vector.extract_strided_slice %5 {offsets = [0, 0], sizes = [1, 64], strides = [1, 1]} : vector<6x64xf32> to vector<1x64xf32>
    %7 = vector.extract_strided_slice %5 {offsets = [1, 0], sizes = [1, 64], strides = [1, 1]} : vector<6x64xf32> to vector<1x64xf32>
    %8 = vector.extract_strided_slice %5 {offsets = [2, 0], sizes = [1, 64], strides = [1, 1]} : vector<6x64xf32> to vector<1x64xf32>
    %9 = vector.extract_strided_slice %5 {offsets = [3, 0], sizes = [1, 64], strides = [1, 1]} : vector<6x64xf32> to vector<1x64xf32>
    %10 = vector.extract_strided_slice %5 {offsets = [4, 0], sizes = [1, 64], strides = [1, 1]} : vector<6x64xf32> to vector<1x64xf32>
    %11 = vector.extract_strided_slice %5 {offsets = [5, 0], sizes = [1, 64], strides = [1, 1]} : vector<6x64xf32> to vector<1x64xf32>
    %cst = arith.constant dense<0.000000e+00> : vector<5xf32>
    %12 = vector.multi_reduction <add>, %3, %cst [1] : vector<5x64xf32> to vector<5xf32>
    %13 = vector.shape_cast %12 : vector<5xf32> to vector<5x1xf32>
    %cst_5 = arith.constant 6.400000e+01 : f32
    %14 = vector.broadcast %cst_5 : f32 to vector<5x1xf32>
    %15 = arith.divf %13, %14 : vector<5x1xf32>
    %16 = vector.broadcast %15 : vector<5x1xf32> to vector<5x64xf32>
    %17 = arith.subf %3, %16 : vector<5x64xf32>
    %18 = arith.mulf %17, %17 : vector<5x64xf32>
    %cst_6 = arith.constant dense<0.000000e+00> : vector<5xf32>
    %19 = vector.multi_reduction <add>, %18, %cst_6 [1] : vector<5x64xf32> to vector<5xf32>
    %20 = vector.shape_cast %19 : vector<5xf32> to vector<5x1xf32>
    %cst_7 = arith.constant 6.400000e+01 : f32
    %21 = vector.broadcast %cst_7 : f32 to vector<5x1xf32>
    %22 = arith.divf %20, %21 : vector<5x1xf32>
    %23 = vector.broadcast %15 : vector<5x1xf32> to vector<5x64xf32>
    %24 = arith.subf %3, %23 : vector<5x64xf32>
    %cst_8 = arith.constant 9.99999974E-6 : f32
    %25 = vector.broadcast %cst_8 : f32 to vector<5x1xf32>
    %26 = arith.addf %22, %25 : vector<5x1xf32>
    %27 = math.rsqrt %26 : vector<5x1xf32>
    %28 = vector.broadcast %27 : vector<5x1xf32> to vector<5x64xf32>
    %29 = arith.mulf %24, %28 : vector<5x64xf32>
    %30 = vector.broadcast %6 : vector<1x64xf32> to vector<5x64xf32>
    %31 = arith.mulf %29, %30 : vector<5x64xf32>
    %32 = vector.broadcast %7 : vector<1x64xf32> to vector<5x64xf32>
    %33 = arith.addf %31, %32 : vector<5x64xf32>
    %c0_9 = arith.constant 0 : index
    %c0_10 = arith.constant 0 : index
    %c0_11 = arith.constant 0 : index
    %34 = vector.load %arg3[%c0_9, %c0_10, %c0_11] : memref<1x64x192xf32, #tpu.memory_space<vmem>>, vector<1x64x192xf32>
    %35 = vector.shape_cast %34 : vector<1x64x192xf32> to vector<64x192xf32>
    %cst_12 = arith.constant dense<0.000000e+00> : vector<5x192xf32>
    %36 = tpu.matmul %33, %35, %cst_12 {dimension_numbers = #tpu.dot_dimension_numbers<[1], [0], [0], [1], [0, 0, 1, 1], [], []>} : vector<5x64xf32>, vector<64x192xf32>, vector<5x192xf32> -> vector<5x192xf32>
    %c0_13 = arith.constant 0 : index
    %c0_14 = arith.constant 0 : index
    %c0_15 = arith.constant 0 : index
    %37 = vector.load %arg4[%c0_13, %c0_14, %c0_15] : memref<1x1x192xf32, #tpu.memory_space<vmem>>, vector<1x1x192xf32>
    %38 = vector.shape_cast %37 : vector<1x1x192xf32> to vector<1x192xf32>
    %39 = vector.broadcast %38 : vector<1x192xf32> to vector<5x192xf32>
    %40 = arith.addf %36, %39 : vector<5x192xf32>
    %41 = vector.extract_strided_slice %40 {offsets = [0, 0], sizes = [5, 64], strides = [1, 1]} : vector<5x192xf32> to vector<5x64xf32>
    %42 = vector.shape_cast %41 : vector<5x64xf32> to vector<5x4x16xf32>
    %43 = tpu.transpose %42, [1, 0, 2] : vector<5x4x16xf32> -> vector<4x5x16xf32>
    %44 = vector.extract_strided_slice %40 {offsets = [0, 64], sizes = [5, 64], strides = [1, 1]} : vector<5x192xf32> to vector<5x64xf32>
    %45 = vector.shape_cast %44 : vector<5x64xf32> to vector<5x4x16xf32>
    %46 = tpu.transpose %45, [1, 0, 2] : vector<5x4x16xf32> -> vector<4x5x16xf32>
    %47 = vector.extract_strided_slice %40 {offsets = [0, 128], sizes = [5, 64], strides = [1, 1]} : vector<5x192xf32> to vector<5x64xf32>
    %48 = vector.shape_cast %47 : vector<5x64xf32> to vector<5x4x16xf32>
    %49 = tpu.transpose %48, [1, 0, 2] : vector<5x4x16xf32> -> vector<4x5x16xf32>
    "tpu.trace_start"() <{level = 10 : i32, message = "hqd,hkd->hqk"}> : () -> ()
    %cst_16 = arith.constant dense<0.000000e+00> : vector<4x5x5xf32>
    %50 = tpu.matmul %43, %46, %cst_16 {dimension_numbers = #tpu.dot_dimension_numbers<[2], [2], [1], [1], [0, 0, 0, 1, 1, 1], [0], [0]>} : vector<4x5x16xf32>, vector<4x5x16xf32>, vector<4x5x5xf32> -> vector<4x5x5xf32>
    "tpu.trace_stop"() : () -> ()
    %cst_17 = arith.constant dense<0xFF800000> : vector<4x5xf32>
    %51 = vector.multi_reduction <maximumf>, %50, %cst_17 [2] : vector<4x5x5xf32> to vector<4x5xf32>
    %52 = vector.shape_cast %51 : vector<4x5xf32> to vector<4x5x1xf32>
    %53 = vector.broadcast %52 : vector<4x5x1xf32> to vector<4x5x5xf32>
    %54 = arith.subf %50, %53 : vector<4x5x5xf32>
    %55 = math.exp %54 : vector<4x5x5xf32>
    %cst_18 = arith.constant dense<0.000000e+00> : vector<4x5xf32>
    %56 = vector.multi_reduction <add>, %55, %cst_18 [2] : vector<4x5x5xf32> to vector<4x5xf32>
    %57 = vector.shape_cast %56 : vector<4x5xf32> to vector<4x5x1xf32>
    %58 = tpu.reciprocal %57 {approx = true} : vector<4x5x1xf32> -> vector<4x5x1xf32>
    %59 = vector.broadcast %58 : vector<4x5x1xf32> to vector<4x5x5xf32>
    %60 = arith.mulf %55, %59 : vector<4x5x5xf32>
    "tpu.trace_start"() <{level = 10 : i32, message = "hqk,hkd->hqd"}> : () -> ()
    %cst_19 = arith.constant dense<0.000000e+00> : vector<4x5x16xf32>
    %61 = tpu.matmul %60, %49, %cst_19 {dimension_numbers = #tpu.dot_dimension_numbers<[2], [1], [1], [2], [0, 0, 0, 1, 1, 2], [0], [0]>} : vector<4x5x5xf32>, vector<4x5x16xf32>, vector<4x5x16xf32> -> vector<4x5x16xf32>
    "tpu.trace_stop"() : () -> ()
    %62 = tpu.transpose %61, [1, 0, 2] : vector<4x5x16xf32> -> vector<5x4x16xf32>
    %63 = vector.shape_cast %62 : vector<5x4x16xf32> to vector<5x64xf32>
    %c0_20 = arith.constant 0 : index
    %c0_21 = arith.constant 0 : index
    %c0_22 = arith.constant 0 : index
    %64 = vector.load %arg5[%c0_20, %c0_21, %c0_22] : memref<1x64x64xf32, #tpu.memory_space<vmem>>, vector<1x64x64xf32>
    %65 = vector.shape_cast %64 : vector<1x64x64xf32> to vector<64x64xf32>
    %cst_23 = arith.constant dense<0.000000e+00> : vector<5x64xf32>
    %66 = tpu.matmul %63, %65, %cst_23 {dimension_numbers = #tpu.dot_dimension_numbers<[1], [0], [0], [1], [0, 0, 1, 1], [], []>} : vector<5x64xf32>, vector<64x64xf32>, vector<5x64xf32> -> vector<5x64xf32>
    %67 = vector.broadcast %10 : vector<1x64xf32> to vector<5x64xf32>
    %68 = arith.addf %66, %67 : vector<5x64xf32>
    %69 = arith.addf %68, %3 : vector<5x64xf32>
    %cst_24 = arith.constant dense<0.000000e+00> : vector<5xf32>
    %70 = vector.multi_reduction <add>, %69, %cst_24 [1] : vector<5x64xf32> to vector<5xf32>
    %71 = vector.shape_cast %70 : vector<5xf32> to vector<5x1xf32>
    %cst_25 = arith.constant 6.400000e+01 : f32
    %72 = vector.broadcast %cst_25 : f32 to vector<5x1xf32>
    %73 = arith.divf %71, %72 : vector<5x1xf32>
    %74 = vector.broadcast %73 : vector<5x1xf32> to vector<5x64xf32>
    %75 = arith.subf %69, %74 : vector<5x64xf32>
    %76 = arith.mulf %75, %75 : vector<5x64xf32>
    %cst_26 = arith.constant dense<0.000000e+00> : vector<5xf32>
    %77 = vector.multi_reduction <add>, %76, %cst_26 [1] : vector<5x64xf32> to vector<5xf32>
    %78 = vector.shape_cast %77 : vector<5xf32> to vector<5x1xf32>
    %cst_27 = arith.constant 6.400000e+01 : f32
    %79 = vector.broadcast %cst_27 : f32 to vector<5x1xf32>
    %80 = arith.divf %78, %79 : vector<5x1xf32>
    %81 = vector.broadcast %73 : vector<5x1xf32> to vector<5x64xf32>
    %82 = arith.subf %69, %81 : vector<5x64xf32>
    %cst_28 = arith.constant 9.99999974E-6 : f32
    %83 = vector.broadcast %cst_28 : f32 to vector<5x1xf32>
    %84 = arith.addf %80, %83 : vector<5x1xf32>
    %85 = math.rsqrt %84 : vector<5x1xf32>
    %86 = vector.broadcast %85 : vector<5x1xf32> to vector<5x64xf32>
    %87 = arith.mulf %82, %86 : vector<5x64xf32>
    %88 = vector.broadcast %8 : vector<1x64xf32> to vector<5x64xf32>
    %89 = arith.mulf %87, %88 : vector<5x64xf32>
    %90 = vector.broadcast %9 : vector<1x64xf32> to vector<5x64xf32>
    %91 = arith.addf %89, %90 : vector<5x64xf32>
    %c0_29 = arith.constant 0 : index
    %c0_30 = arith.constant 0 : index
    %c0_31 = arith.constant 0 : index
    %92 = vector.load %arg6[%c0_29, %c0_30, %c0_31] : memref<1x64x128xf32, #tpu.memory_space<vmem>>, vector<1x64x128xf32>
    %93 = vector.shape_cast %92 : vector<1x64x128xf32> to vector<64x128xf32>
    %cst_32 = arith.constant dense<0.000000e+00> : vector<5x128xf32>
    %94 = tpu.matmul %91, %93, %cst_32 {dimension_numbers = #tpu.dot_dimension_numbers<[1], [0], [0], [1], [0, 0, 1, 1], [], []>} : vector<5x64xf32>, vector<64x128xf32>, vector<5x128xf32> -> vector<5x128xf32>
    %c0_33 = arith.constant 0 : index
    %c0_34 = arith.constant 0 : index
    %c0_35 = arith.constant 0 : index
    %95 = vector.load %arg7[%c0_33, %c0_34, %c0_35] : memref<1x1x128xf32, #tpu.memory_space<vmem>>, vector<1x1x128xf32>
    %96 = vector.shape_cast %95 : vector<1x1x128xf32> to vector<1x128xf32>
    %97 = vector.broadcast %96 : vector<1x128xf32> to vector<5x128xf32>
    %98 = arith.addf %94, %97 : vector<5x128xf32>
    %cst_36 = arith.constant 0.000000e+00 : f32
    %99 = vector.broadcast %cst_36 : f32 to vector<5x128xf32>
    %100 = arith.maximumf %98, %99 : vector<5x128xf32>
    %c0_37 = arith.constant 0 : index
    %c0_38 = arith.constant 0 : index
    %c0_39 = arith.constant 0 : index
    %101 = vector.load %arg8[%c0_37, %c0_38, %c0_39] : memref<1x128x64xf32, #tpu.memory_space<vmem>>, vector<1x128x64xf32>
    %102 = vector.shape_cast %101 : vector<1x128x64xf32> to vector<128x64xf32>
    %cst_40 = arith.constant dense<0.000000e+00> : vector<5x64xf32>
    %103 = tpu.matmul %100, %102, %cst_40 {dimension_numbers = #tpu.dot_dimension_numbers<[1], [0], [0], [1], [0, 0, 1, 1], [], []>} : vector<5x128xf32>, vector<128x64xf32>, vector<5x64xf32> -> vector<5x64xf32>
    %104 = vector.broadcast %11 : vector<1x64xf32> to vector<5x64xf32>
    %105 = arith.addf %103, %104 : vector<5x64xf32>
    %106 = arith.addf %105, %69 : vector<5x64xf32>
    %c0_41 = arith.constant 0 : index
    %c0_42 = arith.constant 0 : index
    %107 = vector.load %arg15[%c0_41, %c0_42] : memref<5x64xf32, #tpu.memory_space<vmem>>, vector<5x64xf32>
    tpu.vector_store %arg15[%c0_41, %c0_42], %106 {strides = array<i32>} : memref<5x64xf32, #tpu.memory_space<vmem>>, vector<5x64xf32>,
    %c1_i32 = arith.constant 1 : i32
    %108 = arith.cmpi eq, %arg1, %c1_i32 : i32
    %109 = arith.extui %108 : i1 to i32
    %c0_i32_43 = arith.constant 0 : i32
    %110 = arith.cmpi ne, %109, %c0_i32_43 : i32
    scf.if %110 {
      %c0_44 = arith.constant 0 : index
      %c0_45 = arith.constant 0 : index
      %111 = vector.load %arg10[%c0_44, %c0_45] : memref<2x64xf32, #tpu.memory_space<vmem>>, vector<1x64xf32>
      %c1 = arith.constant 1 : index
      %c0_46 = arith.constant 0 : index
      %112 = vector.load %arg10[%c1, %c0_46] : memref<2x64xf32, #tpu.memory_space<vmem>>, vector<1x64xf32>
      %cst_47 = arith.constant dense<0.000000e+00> : vector<5xf32>
      %113 = vector.multi_reduction <add>, %106, %cst_47 [1] : vector<5x64xf32> to vector<5xf32>
      %114 = vector.shape_cast %113 : vector<5xf32> to vector<5x1xf32>
      %cst_48 = arith.constant 6.400000e+01 : f32
      %115 = vector.broadcast %cst_48 : f32 to vector<5x1xf32>
      %116 = arith.divf %114, %115 : vector<5x1xf32>
      %117 = vector.broadcast %116 : vector<5x1xf32> to vector<5x64xf32>
      %118 = arith.subf %106, %117 : vector<5x64xf32>
      %119 = arith.mulf %118, %118 : vector<5x64xf32>
      %cst_49 = arith.constant dense<0.000000e+00> : vector<5xf32>
      %120 = vector.multi_reduction <add>, %119, %cst_49 [1] : vector<5x64xf32> to vector<5xf32>
      %121 = vector.shape_cast %120 : vector<5xf32> to vector<5x1xf32>
      %cst_50 = arith.constant 6.400000e+01 : f32
      %122 = vector.broadcast %cst_50 : f32 to vector<5x1xf32>
      %123 = arith.divf %121, %122 : vector<5x1xf32>
      %124 = vector.broadcast %116 : vector<5x1xf32> to vector<5x64xf32>
      %125 = arith.subf %106, %124 : vector<5x64xf32>
      %cst_51 = arith.constant 9.99999974E-6 : f32
      %126 = vector.broadcast %cst_51 : f32 to vector<5x1xf32>
      %127 = arith.addf %123, %126 : vector<5x1xf32>
      %128 = math.rsqrt %127 : vector<5x1xf32>
      %129 = vector.broadcast %128 : vector<5x1xf32> to vector<5x64xf32>
      %130 = arith.mulf %125, %129 : vector<5x64xf32>
      %131 = vector.broadcast %111 : vector<1x64xf32> to vector<5x64xf32>
      %132 = arith.mulf %130, %131 : vector<5x64xf32>
      %133 = vector.broadcast %112 : vector<1x64xf32> to vector<5x64xf32>
      %134 = arith.addf %132, %133 : vector<5x64xf32>
      %c0_52 = arith.constant 0 : index
      %c0_53 = arith.constant 0 : index
      %c0_54 = arith.constant 0 : index
      %135 = vector.load %arg13[%c0_52, %c0_53, %c0_54] : memref<1x5x64xf32, #tpu.memory_space<vmem>>, vector<1x5x64xf32>
      %136 = vector.shape_cast %135 : vector<1x5x64xf32> to vector<5x64xf32>
      %137 = vector.shape_cast %134 : vector<5x64xf32> to vector<1x5x64xf32>
      tpu.vector_store %arg13[%c0_52, %c0_53, %c0_54], %137 {strides = array<i32>} : memref<1x5x64xf32, #tpu.memory_space<vmem>>, vector<1x5x64xf32>,
      %cst_55 = arith.constant dense<0.000000e+00> : vector<64xf32>
      %138 = vector.multi_reduction <add>, %134, %cst_55 [0] : vector<5x64xf32> to vector<64xf32>
      %139 = vector.shape_cast %138 : vector<64xf32> to vector<1x64xf32>
      %cst_56 = arith.constant 5.000000e+00 : f32
      %140 = vector.broadcast %cst_56 : f32 to vector<1x64xf32>
      %141 = arith.divf %139, %140 : vector<1x64xf32>
      %cst_57 = arith.constant dense<0.000000e+00> : vector<1xf32>
      %142 = vector.multi_reduction <add>, %141, %cst_57 [1] : vector<1x64xf32> to vector<1xf32>
      %143 = vector.shape_cast %142 : vector<1xf32> to vector<1x1xf32>
      %cst_58 = arith.constant 6.400000e+01 : f32
      %144 = vector.broadcast %cst_58 : f32 to vector<1x1xf32>
      %145 = arith.divf %143, %144 : vector<1x1xf32>
      %146 = vector.broadcast %145 : vector<1x1xf32> to vector<1x64xf32>
      %147 = arith.subf %141, %146 : vector<1x64xf32>
      %148 = arith.mulf %147, %147 : vector<1x64xf32>
      %cst_59 = arith.constant dense<0.000000e+00> : vector<1xf32>
      %149 = vector.multi_reduction <add>, %148, %cst_59 [1] : vector<1x64xf32> to vector<1xf32>
      %150 = vector.shape_cast %149 : vector<1xf32> to vector<1x1xf32>
      %cst_60 = arith.constant 6.400000e+01 : f32
      %151 = vector.broadcast %cst_60 : f32 to vector<1x1xf32>
      %152 = arith.divf %150, %151 : vector<1x1xf32>
      %153 = vector.broadcast %145 : vector<1x1xf32> to vector<1x64xf32>
      %154 = arith.subf %141, %153 : vector<1x64xf32>
      %cst_61 = arith.constant 9.99999974E-6 : f32
      %155 = vector.broadcast %cst_61 : f32 to vector<1x1xf32>
      %156 = arith.addf %152, %155 : vector<1x1xf32>
      %157 = math.rsqrt %156 : vector<1x1xf32>
      %158 = vector.broadcast %157 : vector<1x1xf32> to vector<1x64xf32>
      %159 = arith.mulf %154, %158 : vector<1x64xf32>
      %c0_62 = arith.constant 0 : index
      %c0_63 = arith.constant 0 : index
      %160 = vector.load %arg11[%c0_62, %c0_63] : memref<64x4xf32, #tpu.memory_space<vmem>>, vector<64x4xf32>
      %cst_64 = arith.constant dense<0.000000e+00> : vector<1x4xf32>
      %161 = tpu.matmul %159, %160, %cst_64 {dimension_numbers = #tpu.dot_dimension_numbers<[1], [0], [0], [1], [0, 0, 1, 1], [], []>} : vector<1x64xf32>, vector<64x4xf32>, vector<1x4xf32> -> vector<1x4xf32>
      %c0_65 = arith.constant 0 : index
      %c0_66 = arith.constant 0 : index
      %162 = vector.load %arg12[%c0_65, %c0_66] : memref<1x4xf32, #tpu.memory_space<vmem>>, vector<1x4xf32>
      %163 = arith.addf %161, %162 : vector<1x4xf32>
      %c0_67 = arith.constant 0 : index
      %c0_68 = arith.constant 0 : index
      %c0_69 = arith.constant 0 : index
      %164 = vector.load %arg14[%c0_67, %c0_68, %c0_69] : memref<1x1x4xf32, #tpu.memory_space<vmem>>, vector<1x1x4xf32>
      %165 = vector.shape_cast %164 : vector<1x1x4xf32> to vector<1x4xf32>
      %166 = vector.shape_cast %163 : vector<1x4xf32> to vector<1x1x4xf32>
      tpu.vector_store %arg14[%c0_67, %c0_68, %c0_69], %166 {strides = array<i32>} : memref<1x1x4xf32, #tpu.memory_space<vmem>>, vector<1x1x4xf32>,
    } else {
    }
    return
  }
  func.func @transform_0(%arg0: i32, %arg1: i32) -> (i32, i32, i32) {
    %c0_i32 = arith.constant 0 : i32
    %c0_i32_0 = arith.constant 0 : i32
    %c0_i32_1 = arith.constant 0 : i32
    return %arg0, %c0_i32, %c0_i32_0 : i32, i32, i32
  }
  func.func @transform_1(%arg0: i32, %arg1: i32) -> (i32, i32, i32) {
    %c0_i32 = arith.constant 0 : i32
    %c0_i32_0 = arith.constant 0 : i32
    %c0_i32_1 = arith.constant 0 : i32
    return %arg1, %c0_i32, %c0_i32_0 : i32, i32, i32
  }
  func.func @transform_2(%arg0: i32, %arg1: i32) -> (i32, i32, i32) {
    %c0_i32 = arith.constant 0 : i32
    %c0_i32_0 = arith.constant 0 : i32
    %c0_i32_1 = arith.constant 0 : i32
    return %arg1, %c0_i32, %c0_i32_0 : i32, i32, i32
  }
  func.func @transform_3(%arg0: i32, %arg1: i32) -> (i32, i32, i32) {
    %c0_i32 = arith.constant 0 : i32
    %c0_i32_0 = arith.constant 0 : i32
    %c0_i32_1 = arith.constant 0 : i32
    return %arg1, %c0_i32, %c0_i32_0 : i32, i32, i32
  }
  func.func @transform_4(%arg0: i32, %arg1: i32) -> (i32, i32, i32) {
    %c0_i32 = arith.constant 0 : i32
    %c0_i32_0 = arith.constant 0 : i32
    %c0_i32_1 = arith.constant 0 : i32
    return %arg1, %c0_i32, %c0_i32_0 : i32, i32, i32
  }
  func.func @transform_5(%arg0: i32, %arg1: i32) -> (i32, i32, i32) {
    %c0_i32 = arith.constant 0 : i32
    %c0_i32_0 = arith.constant 0 : i32
    %c0_i32_1 = arith.constant 0 : i32
    return %arg1, %c0_i32, %c0_i32_0 : i32, i32, i32
  }
  func.func @transform_6(%arg0: i32, %arg1: i32) -> (i32, i32, i32) {
    %c0_i32 = arith.constant 0 : i32
    %c0_i32_0 = arith.constant 0 : i32
    %c0_i32_1 = arith.constant 0 : i32
    return %arg1, %c0_i32, %c0_i32_0 : i32, i32, i32
  }
  func.func @transform_7(%arg0: i32, %arg1: i32) -> (i32, i32, i32) {
    %c0_i32 = arith.constant 0 : i32
    %c0_i32_0 = arith.constant 0 : i32
    %c0_i32_1 = arith.constant 0 : i32
    return %arg1, %c0_i32, %c0_i32_0 : i32, i32, i32
  }
  func.func @transform_8(%arg0: i32, %arg1: i32) -> (i32, i32) {
    %c0_i32 = arith.constant 0 : i32
    %c0_i32_0 = arith.constant 0 : i32
    %c0_i32_1 = arith.constant 0 : i32
    return %c0_i32, %c0_i32_0 : i32, i32
  }
  func.func @transform_9(%arg0: i32, %arg1: i32) -> (i32, i32) {
    %c0_i32 = arith.constant 0 : i32
    %c0_i32_0 = arith.constant 0 : i32
    %c0_i32_1 = arith.constant 0 : i32
    return %c0_i32, %c0_i32_0 : i32, i32
  }
  func.func @transform_10(%arg0: i32, %arg1: i32) -> (i32, i32) {
    %c0_i32 = arith.constant 0 : i32
    %c0_i32_0 = arith.constant 0 : i32
    %c0_i32_1 = arith.constant 0 : i32
    return %c0_i32, %c0_i32_0 : i32, i32
  }
  func.func @transform_11(%arg0: i32, %arg1: i32) -> (i32, i32, i32) {
    %c0_i32 = arith.constant 0 : i32
    %c0_i32_0 = arith.constant 0 : i32
    %c0_i32_1 = arith.constant 0 : i32
    return %arg0, %c0_i32, %c0_i32_0 : i32, i32, i32
  }
  func.func @transform_12(%arg0: i32, %arg1: i32) -> (i32, i32, i32) {
    %c0_i32 = arith.constant 0 : i32
    %c0_i32_0 = arith.constant 0 : i32
    %c0_i32_1 = arith.constant 0 : i32
    return %arg0, %c0_i32, %c0_i32_0 : i32, i32, i32
  }
}

</mosaic_0001>

<bundles_post_ra>
// kernel: forward_jit.2
= control target key start
LH: loop header
LB: loop body
LE: loop exit
PB: predicated region body
PF: predicated region fallthrough
CT: control target
= control target key end

     0   :  { %s513_s21 = smov 0   ;;  %s669_s0 = inlined_call_operand.vmem [shape: f32[2,4,192], index: 0, kind: input, shape index: {}]   ;;  %s670_s1 = inlined_call_operand.vmem [shape: f32[192,128], index: 1, kind: input, shape index: {}]   ;;  %s671_s2 = inlined_call_operand.vmem [shape: f32[1,128], index: 2, kind: input, shape index: {}]   ;;  %s672_s3 = inlined_call_operand.vmem [shape: f32[1,128], index: 3, kind: input, shape index: {}]   ;;  %s673_s4 = inlined_call_operand.vmem [shape: f32[128,64], index: 4, kind: input, shape index: {}]   ;;  %s674_s5 = inlined_call_operand.vmem [shape: f32[1,64], index: 5, kind: input, shape index: {}]   ;;  %s675_s6 = inlined_call_operand.vmem [shape: f32[2,5,64], index: 6, kind: output, shape index: {}]  }
   0x1 LB: > { %s448_s22 = sadd.s32 4294967295, %s476_s21   ;;  %p452_p0 = scmp.ge.s32.totalorder %s476_s21, 1  ;;  %s476_s21 = sphi %s513_s21, %s16_s21  }
   0x2   : > { %p212_p1 = scmp.lt.s32.totalorder %s476_s21, 3 }
   0x4   : > { %p213_p2 = pnand %p452_p0, %p212_p1 }
   0x5   : > { %p241_p3 = scmp.lt.s32.totalorder (!%p213_p2), %s448_s22, 1 }
   0x6   : > { %216 = sbr.rel (%p213_p2) target bundleno = 312 (0x138), region = 44 }
   0xb   : > { %v283_v0 = vld [vmem:[%s670_s1 + $0x78] sm:$0xff]  ;;  %v282_v1 = vld [vmem:[%s670_s1 + $0x70] sm:$0xff]  ;;  %v281_v2 = vld [vmem:[%s670_s1 + $0x68] sm:$0xff]  ;;  %s677_s22 = smov (!%p241_p3, %s448_s22), 1  ;;  %vm301_vm0 = vcmask 523264   ;;  %vm391_vm1 = vcmask 516096  }
   0xc   : > { %304 = vmatpush.msra.mxu0 %v283_v0  ;;  %v291_v3 = vld [vmem:[%s670_s1 + $0xb8] sm:$0xff]  ;;  %v280_v4 = vld [vmem:[%s670_s1 + $0x60] sm:$0xff]  ;;  %v290_v5 = vld [vmem:[%s670_s1 + $0xb0] sm:$0xff]  ;;  %s459_s11 = sshll.u32 %s677_s22, 3  ;;  %vm393_vm2 = vcmask 519168  }
   0xd   : > { %332 = vmatpush.msra.mxu1 %v291_v3  ;;  %v289_v6 = vld [vmem:[%s670_s1 + $0xa8] sm:$0xff]  ;;  %s245_s16 = scalar_lea.vmem %s669_s0, %s459_s11  ;;  %v279_v7 = vld [vmem:[%s670_s1 + $0x58] sm:$0xff]  ;;  %v288_v8 = vld [vmem:[%s670_s1 + $0xa0] sm:$0xff]  ;;  %s249_s30 = scalar_lea.vmem %s675_s6, %s459_s11 }
   0xe   : > { %305 = vmatpush.msra.mxu0 %v282_v1  ;;  %v267_v9 = vld [vmem:[%s245_s16] sm:$0xff]  ;;  %v278_v10 = vld [vmem:[%s670_s1 + $0x50] sm:$0xff]  ;;  %v265_v11 = vld [vmem:[%s673_s4 + $0x78] sm:$0xff] }
   0xf   : > { %333 = vmatpush.msra.mxu1 %v290_v5  ;;  %297 = vst [vmem:[#allocation1] ss:$2 sm:$0xff] %v267_v9  ;;  %v264_v12 = vld [vmem:[%s673_s4 + $0x70] sm:$0xff]  ;;  %v287_v13 = vld [vmem:[%s670_s1 + $0x98] sm:$0xff]  ;;  %348 = vmatpush.msra.mxu2 %v265_v11  ;;  %v277_v14 = vld [vmem:[%s670_s1 + $0x48] sm:$0xff] }
  0x10   : > { %306 = vmatpush.msra.mxu0 %v281_v2  ;;  %370 = vmatpush.msra.mxu3 %v265_v11  ;;  %v263_v15 = vld [vmem:[%s673_s4 + $0x68] sm:$0xff]  ;;  %v286_v16 = vld [vmem:[%s670_s1 + $0x90] sm:$0xff]  ;;  %v276_v17 = vld [vmem:[%s670_s1 + $0x40] sm:$0xff] }
  0x11   : > { %334 = vmatpush.msra.mxu1 %v289_v6  ;;  %349 = vmatpush.msra.mxu2 %v264_v12  ;;  %v262_v18 = vld [vmem:[%s673_s4 + $0x60] sm:$0xff]  ;;  %v285_v19 = vld [vmem:[%s670_s1 + $0x88] sm:$0xff]  ;;  %v275_v20 = vld [vmem:[%s670_s1 + $0x38] sm:$0xff] }
  0x12   : > { %307 = vmatpush.msra.mxu0 %v280_v4  ;;  %371 = vmatpush.msra.mxu3 %v264_v12  ;;  %v261_v21 = vld [vmem:[%s673_s4 + $0x58] sm:$0xff]  ;;  %v284_v22 = vld [vmem:[%s670_s1 + $0x80] sm:$0xff]  ;;  %v274_v23 = vld [vmem:[%s670_s1 + $0x30] sm:$0xff] }
  0x13   : > { %335 = vmatpush.msra.mxu1 %v288_v8  ;;  %350 = vmatpush.msra.mxu2 %v263_v15  ;;  %v260_v25 = vld [vmem:[%s673_s4 + $0x50] sm:$0xff]  ;;  %v273_v26 = vld [vmem:[%s670_s1 + $0x28] sm:$0xff]  ;;  %v272_v28 = vld [vmem:[%s670_s1 + $0x20] sm:$0xff] }
  0x14   : > { %308 = vmatpush.msra.mxu0 %v279_v7  ;;  %372 = vmatpush.msra.mxu3 %v263_v15  ;;  %v259_v27 = vld [vmem:[%s673_s4 + $0x48] sm:$0xff]  ;;  %v258_v29 = vld [vmem:[%s673_s4 + $0x40] sm:$0xff]  ;;  %v271_v30 = vld [vmem:[%s670_s1 + $0x18] sm:$0xff] }
  0x15   : > { %336 = vmatpush.msra.mxu1 %v287_v13  ;;  %351 = vmatpush.msra.mxu2 %v262_v18  ;;  %v257_v31 = vld [vmem:[%s673_s4 + $0x38] sm:$0xff]  ;;  %v270_v32 = vld [vmem:[%s670_s1 + $0x10] sm:$0xff]  ;;  %v269_v34 = vld [vmem:[%s670_s1 + $0x8] sm:$0xff] }
  0x16   : > { %309 = vmatpush.msra.mxu0 %v278_v10  ;;  %v299_v24 = vld.sshfl [vmem:[#allocation1 + $0x8] sm:$0xff pattern:$0x75316420]  ;;  %373 = vmatpush.msra.mxu3 %v262_v18  ;;  %v256_v33 = vld [vmem:[%s673_s4 + $0x30] sm:$0xff]  ;;  %v268_v36 = vld [vmem:[%s670_s1] sm:$0xff] }
  0x17   : > { %337 = vmatpush.msra.mxu1 %v286_v16  ;;  %352 = vmatpush.msra.mxu2 %v261_v21  ;;  %v255_v35 = vld [vmem:[%s673_s4 + $0x28] sm:$0xff]  ;;  %v298_v37 = vld.sshfl [vmem:[#allocation1] sm:$0xff pattern:$0x75316420]  ;;  %v253_v39 = vld [vmem:[%s673_s4 + $0x18] sm:$0xff] }
  0x18   : > { %310 = vmatpush.msra.mxu0 %v277_v14  ;;  %374 = vmatpush.msra.mxu3 %v261_v21  ;;  %v254_v38 = vld [vmem:[%s673_s4 + $0x20] sm:$0xff]  ;;  %v252_v40 = vld [vmem:[%s673_s4 + $0x10] sm:$0xff]  ;;  %v251_v41 = vld [vmem:[%s673_s4 + $0x8] sm:$0xff] }
  0x19   : > { %338 = vmatpush.msra.mxu1 %v285_v19  ;;  %353 = vmatpush.msra.mxu2 %v260_v25  ;;  %v250_v42 = vld [vmem:[%s673_s4] sm:$0xff] }
  0x1a   : > { %311 = vmatpush.msra.mxu0 %v276_v17  ;;  %375 = vmatpush.msra.mxu3 %v260_v25  ;;  %v369_v43 = vld [vmem:[%s672_s3] sm:$0x1] }
  0x1b   : > { %339 = vmatpush.msra.mxu1 %v284_v22  ;;  %354 = vmatpush.msra.mxu2 %v259_v27  ;;  %v468_v44 = vld [vmem:[%s671_s2] ss:$0 sm:$0xff] }
  0x1c   : > { %312 = vmatpush.msra.mxu0 %v275_v20  ;;  %456 = vmatmul.msk.f32.vlgmr.msra.gmra.mxu1 %vm301_vm0, %v299_v24  ;;  %v266_v50 = vld [vmem:[%s674_s5] sm:$0x1] }
  0x1d   : > { %376 = vmatpush.msra.mxu3 %v259_v27  ;;  %355 = vmatpush.msra.mxu2 %v258_v29  ;;  %v469_v54 = vld [vmem:[%s674_s5] ss:$0 sm:$0xff] }
  0x1e   : > { %313 = vmatpush.msra.mxu0 %v274_v23 }
  0x1f   : > { %377 = vmatpush.msra.mxu3 %v258_v29  ;;  %356 = vmatpush.msra.mxu2 %v257_v31 }
  0x20   : > { %314 = vmatpush.msra.mxu0 %v273_v26 }
  0x21   : > { %378 = vmatpush.msra.mxu3 %v257_v31  ;;  %357 = vmatpush.msra.mxu2 %v256_v33 }
  0x22   : > { %315 = vmatpush.msra.mxu0 %v272_v28 }
  0x23   : > { %379 = vmatpush.msra.mxu3 %v256_v33  ;;  %358 = vmatpush.msra.mxu2 %v255_v35 }
  0x24   : > { %316 = vmatpush.msra.mxu0 %v271_v30 }
  0x25   : > { %380 = vmatpush.msra.mxu3 %v255_v35  ;;  %359 = vmatpush.msra.mxu2 %v254_v38 }
  0x26   : > { %317 = vmatpush.msra.mxu0 %v270_v32 }
  0x27   : > { %381 = vmatpush.msra.mxu3 %v254_v38  ;;  %360 = vmatpush.msra.mxu2 %v253_v39 }
  0x28   : > { %318 = vmatpush.msra.mxu0 %v269_v34 }
  0x29   : > { %382 = vmatpush.msra.mxu3 %v253_v39  ;;  %361 = vmatpush.msra.mxu2 %v252_v40 }
  0x2a   : > { %319 = vmatpush.msra.mxu0 %v268_v36 }
  0x2b   : > { %320 = vmatmul.f32.vlgmr.msra.gmra.mxu0 %v298_v37  ;;  %383 = vmatpush.msra.mxu3 %v252_v40 }
  0x2c   : > { %362 = vmatpush.msra.mxu2 %v251_v41 }
  0x2d   : > { %384 = vmatpush.msra.mxu3 %v251_v41 }
  0x2e   : > { %363 = vmatpush.msra.mxu2 %v250_v42 }
  0x2f   : > { %385 = vmatpush.msra.mxu3 %v250_v42 }
  0x30   : > { %386 = vmatmul.f32.vlgmr.msra.gmra.mxu3 %v369_v43 }
  0x99   : > { %v341_v46 = vpop.f32.mrf.mxu1 }
  0xa8   : > { %v321_v45 = vpop.f32.mrf.mxu0 }
  0xa9   : > { %v322_v47 = vadd.f32 %v468_v44, %v321_v45 }
  0xab   : > { %v342_v48 = vadd.f32 %v341_v46, %v322_v47 }
  0xad   : > { %v344_v49 = vmax.f32 %v342_v48, 0.0 }
  0xaf   : > { %364 = vmatmul.f32.vlgmr.msra.gmra.mxu2 %v344_v49 }
  0xb3   : > { %v387_v51 = vpop.f32.mrf.mxu3 }
  0xb4   : > { %v388_v52 = vadd.f32 %v387_v51, %v266_v50 }
  0xb6   : > { %v390_v53 = vmax.f32 %v388_v52, 0.0 }
  0xb8   : > { %392 = vst.msk [vmem:[%s249_s30] sm:$0x1] %vm391_vm1, %v390_v53 }
 0x132   : > { %v365_v55 = vpop.f32.mrf.mxu2 }
 0x133   : > { %v366_v56 = vadd.f32 %v469_v54, %v365_v55 }
 0x135   : > { %v368_v57 = vmax.f32 %v366_v56, 0.0 }
 0x137   : > { %394 = vst.msk [vmem:[%s249_s30 + $0x1] sm:$0xf] %vm393_vm2, %v368_v57 }
 0x138 PF: > { %s16_s21 = sadd.s32 1, %s476_s21  }
 0x139   : > { %p13_p4 = scmp.ge.s32.totalorder %s16_s21, 4  }
 0x13b   :  { %15 = sbr.rel (!%p13_p4) target bundleno = 1 (0x1), region = 74 }

// kernel: forward_jit.3
= control target key start
LH: loop header
LB: loop body
LE: loop exit
PB: predicated region body
PF: predicated region fallthrough
CT: control target
= control target key end

     0   :  { %s2591_s0 = inlined_call_operand.vmem [shape: f32[2,5,64], index: 0, kind: input, shape index: {}]   ;;  %s2592_s1 = inlined_call_operand.vmem [shape: f32[2,64,192], index: 1, kind: input, shape index: {}]   ;;  %s2593_s2 = inlined_call_operand.vmem [shape: f32[2,1,192], index: 2, kind: input, shape index: {}]   ;;  %s2594_s3 = inlined_call_operand.vmem [shape: f32[2,64,64], index: 3, kind: input, shape index: {}]   ;;  %s2595_s4 = inlined_call_operand.vmem [shape: f32[2,64,128], index: 4, kind: input, shape index: {}]   ;;  %s2596_s5 = inlined_call_operand.vmem [shape: f32[2,1,128], index: 5, kind: input, shape index: {}]   ;;  %s2597_s6 = inlined_call_operand.vmem [shape: f32[2,128,64], index: 6, kind: input, shape index: {}]   ;;  %s2598_s7 = inlined_call_operand.vmem [shape: f32[2,6,64], index: 7, kind: input, shape index: {}]   ;;  %s2599_s8 = inlined_call_operand.vmem [shape: f32[2,64], index: 8, kind: input, shape index: {}]   ;;  %s2600_s9 = inlined_call_operand.vmem [shape: f32[64,4], index: 9, kind: input, shape index: {}]   ;;  %s2601_s10 = inlined_call_operand.vmem [shape: f32[1,4], index: 10, kind: input, shape index: {}]   ;;  %s2602_s11 = inlined_call_operand.hbm [shape: f32[2,5,64], index: 11, kind: output, shape index: {0}]   ;;  %s2603_s12 = inlined_call_operand.vmem [shape: f32[2,1,4], index: 12, kind: output, shape index: {1}]  }
   0x1   :  { %2619 = sst [smem:[#allocation18_spill]] %s2591_s0 }
   0x2   :  { %2620 = sst [smem:[#allocation19_spill]] %s2592_s1 }
   0x3   :  { %2621 = sst [smem:[#allocation20_spill]] %s2593_s2 }
   0x4   :  { %2622 = sst [smem:[#allocation21_spill]] %s2600_s9 }
   0x5   :  { %2623 = sst [smem:[#allocation22_spill]] %s2601_s10 }
   0x6   :  { %2624 = sst [smem:[#allocation23_spill]] %s2602_s11 }
   0x7   :  { %18 = vsyncpa [#allocation4], 0 }
   0x8   :  { %20 = vsyncpa [#allocation4 + $0x1], 0  ;;  %s2100_s21 = smov 0   ;;  %s2102_s22 = smov 0  }
   0x9   :  { %s2104_s23 = smov 0   ;;  %s2106_s24 = smov 0  }
   0xa   :  { %s2108_s25 = smov 0   ;;  %s2110_s26 = smov 0  }
   0xb   :  { %s2112_s27 = smov 0   ;;  %s2114_s28 = smov 0  }
   0xc LB: > { %2625 = sst [smem:[#allocation6_spill]] %s1994_s21  ;;  %s1767_s29 = sadd.s32 4294967295, %s2022_s28   ;;  %s2022_s28 = sphi %s2114_s28, %s26_s28   ;;  %s2018_s27 = sphi %s2112_s27, %s2660_s27   ;;  %s2014_s26 = sphi %s2110_s26, %s2659_s26   ;;  %s2010_s25 = sphi %s2108_s25, %s2658_s25   ;;  %s2006_s24 = sphi %s2106_s24, %s2657_s24   ;;  %s2002_s23 = sphi %s2104_s23, %s2656_s23   ;;  %s1998_s22 = sphi %s2102_s22, %s2655_s22   ;;  %s1994_s21 = sphi %s2100_s21, %s2654_s21  }
   0xd   : > { %2626 = sst [smem:[#allocation7_spill]] %s1998_s22  ;;  %s1768_s30 = sadd.s32 4294967294, %s2022_s28  }
   0xe   : > { %2627 = sst [smem:[#allocation8_spill]] %s2002_s23  ;;  %s35_s13 = sadd.s32 1, %s2014_s26 }
   0xf   : > { %2628 = sst [smem:[#allocation9_spill]] %s2010_s25  ;;  %p36_p0 = scmp.ge.s32.totalorder %s35_s13, 2 }
  0x10   : > { %2629 = sst [smem:[#allocation10_spill]] %s2014_s26  ;;  %s38_s14 = sadd.s32 1, %s2018_s27 }
  0x11   : > { %2630 = sst [smem:[#allocation11_spill]] %s2018_s27  ;;  %p326_p1 = scmp.ne.s32.totalorder %s2002_s23, %s1998_s22 }
  0x12   : > { %2631 = sst [smem:[#allocation12_spill]] %s2022_s28  ;;  %p327_p2 = scmp.eq.s32.totalorder %s1767_s29, 3 }
  0x13   : > { %s2662_s13 = smov (%p36_p0, %s35_s13), 0  ;;  %s2664_s14 = smov (!%p36_p0, %s38_s14), %s2018_s27 }
  0x14   : > { %2632 = sst [smem:[#allocation13_spill]] %s2662_s13  ;;  %p2149_p3 = por %p327_p2, %p326_p1 }
  0x15   : > { %p332_p4 = scmp.ne.s32.totalorder %s1998_s22, %s1994_s21  ;;  %p40_p5 = scmp.ge.s32.totalorder %s2664_s14, 2 }
  0x16   : > { %s2633_s15 = scalar_select %p2149_p3, 1, 0 }
  0x17   : > { %p333_p6 = scmp.eq.s32.totalorder %s1768_s30, 3  ;;  %p1771_p7 = scmp.ge.s32.totalorder %s2022_s28, 1 }
  0x18   : > { %2634 = sst [smem:[#allocation14_spill]] %s2633_s15  ;;  %p445_p8 = scmp.lt.s32.totalorder %s2022_s28, 5 }
  0x19   : > { %s2666_s14 = smov (%p40_p5, %s2664_s14), 0  ;;  %p2159_p9 = por %p333_p6, %p332_p4 }
  0x1a   : > { %2635 = sst [smem:[#allocation15_spill]] %s2666_s14  ;;  %p446_p10 = pnand %p1771_p7, %p445_p8 }
  0x1b   : > { %s2636_s16 = scalar_select %p2159_p9, 1, 0 }
  0x1c   : > { %s313_s17 = ssub.s32 %s2018_s27, %s2666_s14  ;;  %s316_s18 = sadd.s32 1, %s2002_s23 }
  0x1d   : > { %2637 = sst [smem:[#allocation16_spill]] %s2636_s16  ;;  %p314_p11 = scmp.eq.s32.totalorder %s313_s17, 0 }
  0x1e   : > { %449 = sbr.rel (%p446_p10) target bundleno = 2747 (0xabb), region = 64  ;;  %s2606_s20 = sand.u32 (!%p446_p10), 1, %s1998_s22  }
  0x1f   : > { %s2167_s19 = scalar_select %p314_p11, %s2002_s23, %s316_s18  }
  0x20   : > { %p520_p12 = scmp.lt.s32.totalorder (!%p446_p10), %s2010_s25, 1  ;;  %s2173_s29 = sshll.u32 (!%p446_p10), %s2606_s20, 3 }
  0x21   : > { %2638 = sst [smem:[#allocation17_spill]] %s2167_s19  ;;  %p524_p13 = scmp.lt.s32.totalorder (!%p446_p10), %s2006_s24, 1 }
  0x22   : > { %s2639_s0 = sld [smem:[#allocation18_spill]] (!%p446_p10)  ;;  %s514_s13 = scalar_lea.vmem (!%p446_p10), [#allocation3], %s2173_s29 }
  0x23   : > { %s2177_s30 = scalar_select %p520_p12, %s2010_s25, 1 }
  0x24   : > { %s2180_s17 = scalar_select %p524_p13, %s2006_s24, 1 }
  0x25   : > { %s1773_s18 = sshll.u32 %s2177_s30, 3  ;;  %s2640_s1 = sld [smem:[#allocation19_spill]] }
  0x26   : > { %s1811_s23 = sshll.u32 %s2180_s17, 7  ;;  %s1776_s11 = sshll.u32 %s2180_s17, 1 }
  0x27   : > { %s2641_s2 = sld [smem:[#allocation20_spill]]  ;;  %s1812_s10 = sshll.u32 %s2180_s17, 6 }
  0x28   : > { %s523_s19 = scalar_lea.vmem %s2639_s0, %s1773_s18  ;;  %s2206_s14 = scalar_lea.vmem %s2594_s3, %s1812_s10 }
  0x29   : > { %s2211_s18 = scalar_lea.vmem %s2595_s4, %s1812_s10  ;;  %s545_s27 = scalar_lea.vmem %s2596_s5, %s2180_s17 }
  0x2a   : > { %s1783_s22 = sshll.u32 %s2180_s17, 3  ;;  %p1784_p0 = scmp.ne.s32.totalorder %s2006_s24, 0 }
  0x2b   : > { %s2194_s28 = scalar_lea.vmem %s2640_s1, %s1811_s23  ;;  %s2226_s9 = scalar_lea.vmem %s2598_s7, %s1783_s22 }
  0x2c   : > { %561 = sbr.rel (%p1784_p0) target bundleno = 51 (0x33), region = 68 }
  0x2d   : > { %s2200_s25 = scalar_lea.vmem %s2641_s2, %s1776_s11  ;;  %s2220_s11 = scalar_lea.vmem %s2597_s6, %s1811_s23 }
  0x31   : > { %v562_v0 = vld [vmem:[%s523_s19] sm:$0x1f]  ;;  %vm563_vm0 = vcmask 520192  }
  0x32   : > { %564 = vst.msk [vmem:[#allocation2] sm:$0x1f] %vm563_vm0, %v562_v0 }
  0x33 PF: > { %vm567_vm1 = vcmask 520192   ;;  %v2024_v3 = vmov 64.0   ;;  %v615_v15 = vld [vmem:[%s2194_s28 + $0x70] sm:$0xff]  ;;  %v613_v16 = vld [vmem:[%s2194_s28 + $0x60] sm:$0xff]  ;;  %v616_v23 = vld [vmem:[%s2194_s28 + $0x78] sm:$0xff]  ;;  %vm623_vm6 = vcmask 523264  }
  0x34   : > { %1898 = vrcp.f32 %v2024_v3  ;;  %635 = vmatpush.msra.mxu1 %v615_v15  ;;  %v611_v17 = vld [vmem:[%s2194_s28 + $0x50] sm:$0xff]  ;;  %v609_v18 = vld [vmem:[%s2194_s28 + $0x40] sm:$0xff]  ;;  %v614_v24 = vld [vmem:[%s2194_s28 + $0x68] sm:$0xff]  ;;  %s2025_s0 = smov 64   ;;  %s2026_s1 = smov 112   ;;  %vm678_vm7 = vcmask 1047556  }
  0x35   : > { %v607_v19 = vld [vmem:[%s2194_s28 + $0x30] sm:$0xff]  ;;  %v605_v20 = vld [vmem:[%s2194_s28 + $0x20] sm:$0xff]  ;;  %v612_v25 = vld [vmem:[%s2194_s28 + $0x58] sm:$0xff]  ;;  %s2027_s2 = smov 96   ;;  %s2028_s10 = smov 80   ;;  %vm973_vm8 = vcmask 130048  }
  0x36   : > { %636 = vmatpush.msra.mxu1 %v613_v16  ;;  %v603_v21 = vld [vmem:[%s2194_s28 + $0x10] sm:$0xff]  ;;  %v601_v22 = vld [vmem:[%s2194_s28] sm:$0xff]  ;;  %v610_v26 = vld [vmem:[%s2194_s28 + $0x48] sm:$0xff]  ;;  %v2029_v55 = vmov 1983009808   ;;  %vm1078_vm9 = vcmask 36864  }
  0x37   : > { %v608_v27 = vld [vmem:[%s2194_s28 + $0x38] sm:$0xff]  ;;  %v606_v28 = vld [vmem:[%s2194_s28 + $0x28] sm:$0xff]  ;;  %v2257_v39 = vld [vmem:[%s2226_s9] sm:$0x3f]  ;;  %v683_v56 = vunpack.c.l.s4 %v2029_v55  ;;  %v2030_v62 = vmov 1934713408  }
  0x38   : > { %637 = vmatpush.msra.mxu1 %v611_v17  ;;  %v604_v29 = vld [vmem:[%s2194_s28 + $0x18] sm:$0xff]  ;;  %v602_v32 = vld [vmem:[%s2194_s28 + $0x8] sm:$0xff]  ;;  %v597_v41 = vperm.slane %v2257_v39, 0  ;;  %v599_v44 = vperm.slane %v2257_v39, 1  ;;  %v2264_v47 = vld [vmem:[%s2200_s25] sm:$0x3]  ;;  %v707_v63 = vunpack.c.l.s4 %v2030_v62 }
  0x39   : > { %v2230_v1 = vld [vmem:[#allocation2] sm:$0x1f]  ;;  %v619_v48 = vperm.slane %v2264_v47, 0  ;;  %v2271_v59 = vunpack.c.0.s8 %v683_v56  ;;  %vm1127_vm10 = vcmask 1044480   ;;  %vm1123_vm11 = vcmask 39936   ;;  %s2031_s23 = smov 32  }
  0x3a   : > { %v568_v2 = vsel %vm567_vm1, %v2230_v1, 0.0  ;;  %v1899_v4 = vpop.eup %1898  ;;  %638 = vmatpush.msra.mxu1 %v609_v18  ;;  %v2276_v3 = vunpack.c.0.s8 %v707_v63  ;;  %s2032_s25 = smov 48   ;;  %s2033_s28 = smov 16   ;;  %vm1333_vm12 = vcmask 261120   ;;  %vm1335_vm13 = vcmask 392192  }
  0x3b   : > { %569 = vadd.xlane.f32.xlu0 %v568_v2  ;;  %v572_v5 = vmul.f32 64.0, %v1899_v4  ;;  %vm576_vm2 = vweird.f32 %v1899_v4  ;;  %p1805_p1 = scmp.ne.s32.totalorder %s2006_s24, 1 }
  0x3c   : > { %639 = vmatpush.msra.mxu1 %v607_v19  ;;  %s2642_s21 = sld [smem:[#allocation21_spill]] (!%p1805_p1) }
  0x3d   : > { %v573_v6 = vsub.f32 1.0, %v572_v5  ;;  %s2644_s26 = sld [smem:[#allocation22_spill]] (!%p1805_p1) }
  0x3e   : > { %640 = vmatpush.msra.mxu1 %v605_v20 }
  0x3f   : > { %v574_v7 = vmul.f32 %v1899_v4, %v573_v6 }
  0x40   : > { %641 = vmatpush.msra.mxu1 %v603_v21 }
  0x41   : > { %v575_v8 = vadd.f32 %v1899_v4, %v574_v7 }
  0x42   : > { %642 = vmatpush.msra.mxu1 %v601_v22  ;;  %s2643_s16 = smov (!%p1805_p1), %s2642_s21 }
  0x43   : > { %v2234_v9 = vsel %vm576_vm2, %v1899_v4, %v575_v8 }
  0x44   : > { %655 = vmatpush.msrb.mxu1 %v616_v23 }
  0x46   : > { %656 = vmatpush.msrb.mxu1 %v614_v24 }
  0x48   : > { %657 = vmatpush.msrb.mxu1 %v612_v25 }
  0x4a   : > { %658 = vmatpush.msrb.mxu1 %v610_v26 }
  0x4c   : > { %659 = vmatpush.msrb.mxu1 %v608_v27 }
  0x4e   : > { %660 = vmatpush.msrb.mxu1 %v606_v28 }
  0x50   : > { %661 = vmatpush.msrb.mxu1 %v604_v29 }
  0x52   : > { %662 = vmatpush.msrb.mxu1 %v602_v32 }
  0xae   : > { %v570_v10 = vpop.xlane.xlu0 %569 }
  0xaf   : > { %v578_v11 = vmul.f32 %v2234_v9, %v570_v10 }
  0xb1   : > { %v579_v12 = vsub.f32 %v2230_v1, %v578_v11 }
  0xb3   : > { %v580_v13 = vmul.f32 %v579_v12, %v579_v12 }
  0xb5   : > { %v581_v14 = vsel %vm567_vm1, %v580_v13, 0.0 }
  0xb6   : > { %582 = vadd.xlane.f32.xlu0 %v581_v14 }
 0x129   : > { %v583_v30 = vpop.xlane.xlu0 %582 }
 0x12a   : > { %v584_v31 = vmul.f32 %v583_v30, %v2234_v9 }
 0x12c   : > { %v585_v33 = vadd.f32 1e-05, %v584_v31 }
 0x12e   : > { %1900 = vrsqrt.f32 %v585_v33  ;;  %vm592_vm4 = vweird.f32 %v585_v33 }
 0x134   : > { %v1901_v34 = vpop.eup %1900 }
 0x135   : > { %v587_v35 = vmul.f32 %v1901_v34, %v585_v33  ;;  %vm593_vm3 = vweird.f32 %v1901_v34 }
 0x136   : > { %vm594_vm5 = vmor %vm592_vm4, %vm593_vm3 }
 0x137   : > { %v588_v36 = vmul.f32 %v1901_v34, %v587_v35 }
 0x139   : > { %v589_v37 = vmul.f32 0.5, %v588_v36 }
 0x13b   : > { %v590_v38 = vsub.f32 1.5, %v589_v37 }
 0x13d   : > { %v591_v40 = vmul.f32 %v1901_v34, %v590_v38 }
 0x13f   : > { %v595_v42 = vsel %vm594_vm5, %v1901_v34, %v591_v40 }
 0x140   : > { %v596_v43 = vmul.f32 %v595_v42, %v579_v12 }
 0x142   : > { %v598_v45 = vmul.f32 %v597_v41, %v596_v43 }
 0x144   : > { %v600_v46 = vadd.f32 %v599_v44, %v598_v45 }
 0x146   : > { %1785 = vmatmul.msk.f32.vlgmr.msra.gmra.mxu1 %vm623_vm6, %v600_v46 }
 0x14e   : > { %1786 = vmatmul.msk.f32.vlgmr.msrb.gmra.mxu1 %vm623_vm6, %v600_v46 }
 0x1c3   : > { %v644_v49 = vpop.f32.mrf.mxu1 }
 0x1c4   : > { %v645_v50 = vadd.f32 %v644_v49, %v619_v48 }
 0x1c6   : > { %769 = vrot.lane.b32.xlu0 %v645_v50, %s2025_s0  ;;  %668 = vrot.lane.b32.xlu2 %v645_v50, %s2026_s1  ;;  %v680_v23 = vrot.slane %v645_v50, 4 }
 0x1c7   : > { %671 = vrot.lane.b32.xlu1 %v645_v50, %s2027_s2 }
 0x1cf   : > { %674 = vrot.lane.b32.xlu1 %v645_v50, %s2028_s10 }
 0x220   : > { %v669_v52 = vpop.permute.xlu2 %668 }
 0x221   : > { %v692_v11 = vrot.slane %v669_v52, 4 }
 0x238   : > { %v770_v14 = vpop.permute.xlu0 %769 }
 0x239   : > { %v672_v51 = vpop.permute.xlu1 %671  ;;  %v783_v20 = vrot.slane %v770_v14, 4 }
 0x23a   : > { %773 = vrot.lane.b32.xlu2 %v672_v51, %s2025_s0  ;;  %v677_v54 = vrot.slane %v672_v51, 4  ;;  %v681_v30 = vsel %vm678_vm7, %v672_v51, %v680_v23 }
 0x23b   : > { %v689_v40 = vperm.slane %v681_v30, %v2271_v59 }
 0x23c   : > { %v679_v58 = vsel %vm678_vm7, %v677_v54, %v645_v50 }
 0x23d   : > { %v685_v61 = vperm.slane %v679_v58, %v2271_v59 }
 0x23f   : > { %v704_v2 = vrot.slane %v685_v61, 4 }
 0x241   : > { %v675_v53 = vpop.permute.xlu1 %674 }
 0x242   : > { %771 = vrot.lane.b32.xlu2 %v669_v52, %s2025_s0  ;;  %775 = vrot.lane.b32.xlu1 %v675_v53, %s2025_s0  ;;  %v690_v57 = vrot.slane %v675_v53, 4  ;;  %v693_v15 = vsel %vm678_vm7, %v675_v53, %v692_v11 }
 0x243   : > { %v701_v21 = vperm.slane %v693_v15, %v2271_v59 }
 0x244   : > { %v691_v60 = vsel %vm678_vm7, %v690_v57, %v669_v52 }
 0x245   : > { %v697_v0 = vperm.slane %v691_v60, %v2271_v59  ;;  %v714_v33 = vrot.slane %v701_v21, 4 }
 0x247   : > { %v702_v5 = vrot.slane %v697_v0, 4  ;;  %v705_v6 = vsel %vm678_vm7, %v697_v0, %v704_v2  ;;  %v715_v45 = vsel %vm678_vm7, %v714_v33, %v689_v40 }
 0x248   : > { %v713_v7 = vperm.slane %v705_v6, %v2276_v3  ;;  %v734_v54 = vperm.slane %v715_v45, %v2276_v3 }
 0x249   : > { %v703_v8 = vsel %vm678_vm7, %v702_v5, %v685_v61 }
 0x24a   : > { %v709_v12 = vperm.slane %v703_v8, %v2276_v3  ;;  %v718_v13 = vrot.slane %v713_v7, 4  ;;  %v738_v8 = vperm.slane %v734_v54, %v2271_v59 }
 0x24c   : > { %v716_v18 = vrot.slane %v709_v12, 4  ;;  %v719_v19 = vsel %vm678_vm7, 0.0, %v718_v13  ;;  %v720_v55 = vsel %vm678_vm7, %v718_v13, %v709_v12 }
 0x24d   : > { %v725_v26 = vrot.slane %v719_v19, 4  ;;  %v724_v6 = vperm.slane %v720_v55, %v2271_v59  ;;  %v756_v19 = vperm.slane %v738_v8, %v2276_v3 }
 0x24e   : > { %v717_v32 = vsel %vm678_vm7, 0.0, %v716_v18  ;;  %v751_v18 = vrot.slane %v738_v8, 4 }
 0x24f   : > { %v726_v41 = vsel %vm678_vm7, %v725_v26, %v717_v32 }
 0x250   : > { %v730_v50 = vperm.slane %v726_v41, %v2271_v59  ;;  %v752_v32 = vsel %vm678_vm7, 0.0, %v751_v18 }
 0x252   : > { %v739_v63 = vrot.slane %v730_v50, 4 }
 0x254   : > { %v740_v11 = vsel %vm678_vm7, %v739_v63, %v724_v6 }
 0x294   : > { %v774_v4 = vpop.permute.xlu2 %773 }
 0x295   : > { %v781_v10 = vrot.slane %v774_v4, 4  ;;  %v784_v27 = vsel %vm678_vm7, %v774_v4, %v783_v20 }
 0x296   : > { %v792_v35 = vperm.slane %v784_v27, %v2271_v59 }
 0x297   : > { %v782_v17 = vsel %vm678_vm7, %v781_v10, %v770_v14 }
 0x298   : > { %v788_v24 = vperm.slane %v782_v17, %v2271_v59  ;;  %v746_v17 = vperm.slane %v740_v11, %v2276_v3 }
 0x29a   : > { %v807_v36 = vrot.slane %v788_v24, 4 }
 0x29c   : > { %v772_v16 = vpop.permute.xlu2 %771 }
 0x29d   : > { %v795_v22 = vrot.slane %v772_v16, 4 }
 0x2b4   : > { %v776_v25 = vpop.permute.xlu1 %775 }
 0x2b5   : > { %v793_v28 = vrot.slane %v776_v25, 4  ;;  %v796_v29 = vsel %vm678_vm7, %v776_v25, %v795_v22  ;;  %v741_v22 = vrot.slane %v724_v6, 4 }
 0x2b6   : > { %v804_v31 = vperm.slane %v796_v29, %v2271_v59  ;;  %v763_v29 = vrot.slane %v746_v17, 4 }
 0x2b7   : > { %v794_v34 = vsel %vm678_vm7, %v793_v28, %v772_v16  ;;  %v761_v28 = vrot.slane %v756_v19, 4 }
 0x2b8   : > { %v800_v37 = vperm.slane %v794_v34, %v2271_v59  ;;  %v817_v38 = vrot.slane %v804_v31, 4  ;;  %v742_v31 = vsel %vm678_vm7, %v730_v50, %v741_v22 }
 0x2b9   : > { %v762_v33 = vsel %vm678_vm7, %v761_v28, %v746_v17 }
 0x2ba   : > { %v805_v42 = vrot.slane %v800_v37, 4  ;;  %v808_v43 = vsel %vm678_vm7, %v800_v37, %v807_v36  ;;  %v818_v44 = vsel %vm678_vm7, %v817_v38, %v792_v35  ;;  %v764_v35 = vsel %vm678_vm7, %v756_v19, %v763_v29 }
 0x2bb   : > { %v816_v46 = vperm.slane %v808_v43, %v2276_v3  ;;  %v837_v48 = vperm.slane %v818_v44, %v2276_v3  ;;  %v750_v36 = vperm.slane %v742_v31, %v2276_v3  ;;  %v760_v37 = vperm.slane %v752_v32, %v2276_v3 }
 0x2bc   : > { %v806_v49 = vsel %vm678_vm7, %v805_v42, %v788_v24 }
 0x2bd   : > { %v812_v51 = vperm.slane %v806_v49, %v2276_v3  ;;  %v821_v52 = vrot.slane %v816_v46, 4  ;;  %v841_v53 = vperm.slane %v837_v48, %v2271_v59  ;;  %v765_v38 = vrot.slane %v760_v37, 4 }
 0x2be   : > { %v767_v40 = vrot.slane %v750_v36, 4 }
 0x2bf   : > { %v819_v56 = vrot.slane %v812_v51, 4  ;;  %v822_v57 = vsel %vm678_vm7, 0.0, %v821_v52  ;;  %v823_v58 = vsel %vm678_vm7, %v821_v52, %v812_v51  ;;  %v854_v60 = vrot.slane %v841_v53, 4 }
 0x2c0   : > { %v828_v61 = vrot.slane %v822_v57, 4  ;;  %v827_v62 = vperm.slane %v823_v58, %v2271_v59  ;;  %v859_v10 = vperm.slane %v841_v53, %v2276_v3  ;;  %v766_v41 = vsel %vm678_vm7, %v765_v38, %v750_v36  ;;  %v664_v53 = vpop.f32.mrf.mxu1 }
 0x2c1   : > { %v820_v0 = vsel %vm678_vm7, 0.0, %v819_v56  ;;  %v855_v5 = vsel %vm678_vm7, 0.0, %v854_v60  ;;  %v768_v42 = vsel %vm678_vm7, %v760_v37, %v767_v40  ;;  %v620_v52 = vperm.slane %v2264_v47, 1 }
 0x2c2   : > { %v829_v2 = vsel %vm678_vm7, %v828_v61, %v820_v0  ;;  %v844_v4 = vrot.slane %v827_v62, 4  ;;  %v863_v14 = vperm.slane %v855_v5, %v2276_v3  ;;  %v864_v21 = vrot.slane %v859_v10, 4 }
 0x2c3   : > { %v833_v7 = vperm.slane %v829_v2, %v2271_v59  ;;  %v665_v54 = vadd.f32 %v664_v53, %v620_v52 }
 0x2c4   : > { %v868_v23 = vrot.slane %v863_v14, 4 }
 0x2c5   : > { %v842_v12 = vrot.slane %v833_v7, 4  ;;  %v845_v13 = vsel %vm678_vm7, %v833_v7, %v844_v4 }
 0x2c6   : > { %v853_v15 = vperm.slane %v845_v13, %v2276_v3 }
 0x2c7   : > { %v843_v16 = vsel %vm678_vm7, %v842_v12, %v827_v62 }
 0x2c8   : > { %v849_v20 = vperm.slane %v843_v16, %v2276_v3  ;;  %v870_v24 = vrot.slane %v853_v15, 4  ;;  %v869_v27 = vsel %vm678_vm7, %v868_v23, %v853_v15 }
 0x2ca   : > { %v865_v25 = vsel %vm678_vm7, %v864_v21, %v849_v20  ;;  %v866_v26 = vrot.slane %v849_v20, 4  ;;  %v871_v34 = vsel %vm678_vm7, %v863_v14, %v870_v24  ;;  %v884_v20 = vrot.slane %v665_v54, 4 }
 0x2cb   : > { %1787 = vmatpush.xpose.msk.msra.mxu2 %vm973_vm8, %v865_v25 }
 0x2cc   : > { %v867_v30 = vsel %vm678_vm7, %v859_v10, %v866_v26 }
 0x2cd   : > { %1789 = vmatpush.xpose.msk.msra.mxu3 %vm973_vm8, %v867_v30 }
 0x2ce   : > { %1788 = vmatmul.msk.f32.vlgmr.msra.gmra.mxu2 %vm973_vm8, %v762_v33 }
 0x2cf   : > { %1791 = vmatpush.xpose.msk.msrb.mxu2 %vm973_vm8, %v869_v27 }
 0x2d0   : > { %1790 = vmatmul.msk.f32.vlgmr.msra.gmra.mxu3 %vm973_vm8, %v764_v35 }
 0x2d1   : > { %1793 = vmatpush.xpose.msk.msrb.mxu3 %vm973_vm8, %v871_v34 }
 0x2d6   : > { %1792 = vmatmul.msk.f32.vlgmr.msrb.gmra.mxu2 %vm973_vm8, %v766_v41 }
 0x2d8   : > { %1794 = vmatmul.msk.f32.vlgmr.msrb.gmra.mxu3 %vm973_vm8, %v768_v42 }
 0x351   : > { %v997_v43 = vpop.f32.mrf.mxu2 }
 0x352   : > { %v1079_v44 = vsel %vm1078_vm9, %v997_v43, -inf }
 0x353   : > { %v1023_v45 = vpop.f32.mrf.mxu3  ;;  %1080 = vmax.xlane.f32.xlu1 %v1079_v44 }
 0x354   : > { %v1082_v46 = vsel %vm1078_vm9, %v1023_v45, -inf }
 0x355   : > { %1083 = vmax.xlane.f32.xlu2 %v1082_v46 }
 0x359   : > { %v1049_v48 = vpop.f32.mrf.mxu2 }
 0x35a   : > { %v1085_v49 = vsel %vm1078_vm9, %v1049_v48, -inf }
 0x35b   : > { %v1075_v50 = vpop.f32.mrf.mxu3  ;;  %1086 = vmax.xlane.f32.xlu0 %v1085_v49 }
 0x35c   : > { %v1088_v51 = vsel %vm1078_vm9, %v1075_v50, -inf }
 0x35d   : > { %1089 = vmax.xlane.f32.xlu2 %v1088_v51 }
 0x36c   : > { %876 = vrot.lane.b32.xlu1 %v665_v54, %s2027_s2 }
 0x36f   : > { %873 = vrot.lane.b32.xlu0 %v665_v54, %s2026_s1 }
 0x375   : > { %879 = vrot.lane.b32.xlu2 %v665_v54, %s2028_s10 }
 0x3c6   : > { %v1081_v55 = vpop.xlane.xlu1 %1080 }
 0x3c7   : > { %v1091_v56 = vsub.f32 %v997_v43, %v1081_v55 }
 0x3c8   : > { %v1084_v57 = vpop.xlane.xlu2 %1083 }
 0x3c9   : > { %v1095_v58 = vmul.f32 1.442695, %v1091_v56  ;;  %v1092_v60 = vsub.f32 %v1023_v45, %v1084_v57 }
 0x3cb   : > { %1902 = vpow2.f32 %v1095_v58  ;;  %v1097_v61 = vmul.f32 1.442695, %v1092_v60 }
 0x3cd   : > { %1904 = vpow2.f32 %v1097_v61 }
 0x3ce   : > { %v1087_v62 = vpop.xlane.xlu0 %1086 }
 0x3cf   : > { %v1093_v63 = vsub.f32 %v1049_v48, %v1087_v62 }
 0x3d0   : > { %v1090_v0 = vpop.xlane.xlu2 %1089 }
 0x3d1   : > { %v2354_v47 = vpop.eup %1902  ;;  %v1099_v2 = vmul.f32 1.442695, %v1093_v63  ;;  %v1094_v4 = vsub.f32 %v1075_v50, %v1090_v0 }
 0x3d2   : > { %v1103_v5 = vsel %vm1078_vm9, %v2354_v47, 0.0 }
 0x3d3   : > { %v2358_v6 = vpop.eup %1904  ;;  %1906 = vpow2.f32 %v1099_v2  ;;  %v1101_v7 = vmul.f32 1.442695, %v1094_v4  ;;  %1104 = vadd.xlane.f32.xlu1 %v1103_v5 }
 0x3d4   : > { %v1106_v8 = vsel %vm1078_vm9, %v2358_v6, 0.0 }
 0x3d5   : > { %1908 = vpow2.f32 %v1101_v7  ;;  %1107 = vadd.xlane.f32.xlu2 %v1106_v8 }
 0x3d8   : > { %v880_v14 = vpop.permute.xlu2 %879 }
 0x3d9   : > { %v2362_v10 = vpop.eup %1906  ;;  %v894_v17 = vrot.slane %v880_v14, 4 }
 0x3da   : > { %v1109_v11 = vsel %vm1078_vm9, %v2362_v10, 0.0 }
 0x3db   : > { %v2366_v12 = vpop.eup %1908  ;;  %1110 = vadd.xlane.f32.xlu0 %v1109_v11 }
 0x3dc   : > { %v1112_v13 = vsel %vm1078_vm9, %v2366_v12, 0.0 }
 0x3dd   : > { %1113 = vadd.xlane.f32.xlu1 %v1112_v13 }
 0x3de   : > { %v877_v15 = vpop.permute.xlu1 %876 }
 0x3df   : > { %v882_v16 = vrot.slane %v877_v15, 4  ;;  %v885_v25 = vsel %vm678_vm7, %v877_v15, %v884_v20 }
 0x3e0   : > { %v893_v31 = vperm.slane %v885_v25, %v2271_v59 }
 0x3e1   : > { %v883_v18 = vsel %vm678_vm7, %v882_v16, %v665_v54  ;;  %v874_v19 = vpop.permute.xlu0 %873 }
 0x3e2   : > { %v889_v21 = vperm.slane %v883_v18, %v2271_v59  ;;  %v895_v22 = vsel %vm678_vm7, %v894_v17, %v874_v19  ;;  %v896_v23 = vrot.slane %v874_v19, 4 }
 0x3e3   : > { %v901_v24 = vperm.slane %v895_v22, %v2271_v59 }
 0x3e4   : > { %v908_v26 = vrot.slane %v889_v21, 4  ;;  %v897_v27 = vsel %vm678_vm7, %v880_v14, %v896_v23 }
 0x3e5   : > { %v905_v28 = vperm.slane %v897_v27, %v2271_v59  ;;  %v906_v29 = vrot.slane %v901_v24, 4 }
 0x3e6   : > { %v909_v30 = vsel %vm678_vm7, %v901_v24, %v908_v26 }
 0x3e7   : > { %v907_v32 = vsel %vm678_vm7, %v906_v29, %v889_v21  ;;  %v917_v33 = vperm.slane %v909_v30, %v2276_v3  ;;  %v918_v34 = vrot.slane %v905_v28, 4 }
 0x3e8   : > { %v913_v35 = vperm.slane %v907_v32, %v2276_v3 }
 0x3e9   : > { %v919_v36 = vsel %vm678_vm7, %v918_v34, %v893_v31  ;;  %v922_v37 = vrot.slane %v917_v33, 4 }
 0x3ea   : > { %v920_v38 = vrot.slane %v913_v35, 4  ;;  %v938_v40 = vperm.slane %v919_v36, %v2276_v3 }
 0x3eb   : > { %v923_v41 = vsel %vm678_vm7, 0.0, %v922_v37  ;;  %v924_v42 = vsel %vm678_vm7, %v922_v37, %v913_v35 }
 0x3ec   : > { %v929_v43 = vrot.slane %v923_v41, 4  ;;  %v921_v44 = vsel %vm678_vm7, 0.0, %v920_v38  ;;  %v928_v45 = vperm.slane %v924_v42, %v2271_v59  ;;  %v942_v46 = vperm.slane %v938_v40, %v2271_v59 }
 0x3ee   : > { %v930_v48 = vsel %vm678_vm7, %v929_v43, %v921_v44  ;;  %v945_v49 = vrot.slane %v928_v45, 4  ;;  %v955_v50 = vrot.slane %v942_v46, 4  ;;  %v960_v53 = vperm.slane %v942_v46, %v2276_v3 }
 0x3ef   : > { %v934_v51 = vperm.slane %v930_v48, %v2271_v59 }
 0x3f0   : > { %v956_v52 = vsel %vm678_vm7, 0.0, %v955_v50  ;;  %v965_v63 = vrot.slane %v960_v53, 4 }
 0x3f1   : > { %v943_v54 = vrot.slane %v934_v51, 4  ;;  %v946_v55 = vsel %vm678_vm7, %v934_v51, %v945_v49  ;;  %v964_v56 = vperm.slane %v956_v52, %v2276_v3 }
 0x3f2   : > { %v954_v57 = vperm.slane %v946_v55, %v2276_v3 }
 0x3f3   : > { %v969_v58 = vrot.slane %v964_v56, 4  ;;  %v944_v60 = vsel %vm678_vm7, %v943_v54, %v928_v45 }
 0x3f4   : > { %v971_v61 = vrot.slane %v954_v57, 4  ;;  %v950_v62 = vperm.slane %v944_v60, %v2276_v3 }
 0x3f5   : > { %v970_v0 = vsel %vm678_vm7, %v969_v58, %v954_v57 }
 0x3f6   : > { %1799 = vmatpush.msk.msra.mxu0 %vm1127_vm10, %v970_v0  ;;  %v966_v2 = vsel %vm678_vm7, %v965_v63, %v950_v62  ;;  %v972_v4 = vsel %vm678_vm7, %v964_v56, %v971_v61  ;;  %v967_v5 = vrot.slane %v950_v62, 4 }
 0x3f7   : > { %1795 = vmatpush.msk.msra.mxu2 %vm1127_vm10, %v966_v2  ;;  %1801 = vmatpush.msk.msra.mxu1 %vm1127_vm10, %v972_v4 }
 0x3f8   : > { %v968_v7 = vsel %vm678_vm7, %v960_v53, %v967_v5 }
 0x3f9   : > { %1797 = vmatpush.msk.msra.mxu3 %vm1127_vm10, %v968_v7 }
 0x446   : > { %v1105_v8 = vpop.xlane.xlu1 %1104 }
 0x447   : > { %1910 = vrcp.f32 %v1105_v8 }
 0x448   : > { %v1108_v11 = vpop.xlane.xlu2 %1107 }
 0x449   : > { %1912 = vrcp.f32 %v1108_v11 }
 0x44d   : > { %v1911_v13 = vpop.eup %1910 }
 0x44e   : > { %v1119_v14 = vmul.f32 %v1911_v13, %v2354_v47  ;;  %v1111_v15 = vpop.xlane.xlu0 %1110 }
 0x44f   : > { %v1913_v16 = vpop.eup %1912  ;;  %1914 = vrcp.f32 %v1111_v15 }
 0x450   : > { %v1120_v17 = vmul.f32 %v1913_v16, %v2358_v6  ;;  %v1114_v18 = vpop.xlane.xlu1 %1113  ;;  %1796 = vmatmul.msk.f32.vlgmr.msra.gmra.mxu2 %vm1123_vm11, %v1119_v14  ;;  %v1343_v16 = vld [vmem:[%s2206_s14 + $0x30] sm:$0xff] }
 0x451   : > { %1916 = vrcp.f32 %v1114_v18  ;;  %v1341_v18 = vld [vmem:[%s2206_s14 + $0x20] sm:$0xff] }
 0x452   : > { %1798 = vmatmul.msk.f32.vlgmr.msra.gmra.mxu3 %vm1123_vm11, %v1120_v17  ;;  %v1342_v17 = vld [vmem:[%s2206_s14 + $0x28] sm:$0xff] }
 0x455   : > { %v1915_v19 = vpop.eup %1914 }
 0x456   : > { %v1121_v20 = vmul.f32 %v1915_v19, %v2362_v10  ;;  %v1340_v19 = vld [vmem:[%s2206_s14 + $0x18] sm:$0xff] }
 0x457   : > { %v1917_v21 = vpop.eup %1916 }
 0x458   : > { %v1122_v22 = vmul.f32 %v1917_v21, %v2366_v12  ;;  %1800 = vmatmul.msk.f32.vlgmr.msra.gmra.mxu0 %vm1123_vm11, %v1121_v20  ;;  %v1339_v20 = vld [vmem:[%s2206_s14 + $0x10] sm:$0xff]  ;;  %v1338_v21 = vld [vmem:[%s2206_s14 + $0x8] sm:$0xff] }
 0x45a   : > { %1802 = vmatmul.msk.f32.vlgmr.msra.gmra.mxu1 %vm1123_vm11, %v1122_v22  ;;  %v1337_v22 = vld [vmem:[%s2206_s14] sm:$0xff] }
 0x4d3   : > { %v1148_v23 = vpop.f32.mrf.mxu2 }
 0x4d4   : > { %v1231_v24 = vrot.slane %v1148_v23, 4 }
 0x4d5   : > { %v1174_v47 = vpop.f32.mrf.mxu3  ;;  %v1200_v25 = vpop.f32.mrf.mxu0 }
 0x4d6   : > { %v1243_v26 = vrot.slane %v1174_v47, 4  ;;  %v1229_v27 = vrot.slane %v1200_v25, 4  ;;  %v1232_v29 = vsel %vm678_vm7, %v1200_v25, %v1231_v24 }
 0x4d7   : > { %v1226_v28 = vpop.f32.mrf.mxu1  ;;  %v1240_v33 = vperm.slane %v1232_v29, %v2271_v59 }
 0x4d8   : > { %v1230_v6 = vsel %vm678_vm7, %v1229_v27, %v1148_v23  ;;  %v1241_v30 = vrot.slane %v1226_v28, 4  ;;  %v1244_v31 = vsel %vm678_vm7, %v1226_v28, %v1243_v26  ;;  %v1345_v28 = vperm.slane %v2257_v39, 4 }
 0x4d9   : > { %v1236_v10 = vperm.slane %v1230_v6, %v2271_v59  ;;  %v1252_v12 = vperm.slane %v1244_v31, %v2271_v59 }
 0x4da   : > { %v1242_v32 = vsel %vm678_vm7, %v1241_v30, %v1174_v47 }
 0x4db   : > { %v1255_v34 = vrot.slane %v1236_v10, 4  ;;  %v1248_v35 = vperm.slane %v1242_v32, %v2271_v59  ;;  %v1265_v36 = vrot.slane %v1252_v12, 4 }
 0x4dd   : > { %v1253_v37 = vrot.slane %v1248_v35, 4  ;;  %v1256_v38 = vsel %vm678_vm7, %v1248_v35, %v1255_v34  ;;  %v1266_v40 = vsel %vm678_vm7, %v1265_v36, %v1240_v33  ;;  %v1403_v35 = vld [vmem:[%s2211_s18 + $0x38] sm:$0xff]  ;;  %v1401_v36 = vld [vmem:[%s2211_s18 + $0x28] sm:$0xff] }
 0x4de   : > { %v1264_v41 = vperm.slane %v1256_v38, %v2276_v3  ;;  %v1285_v42 = vperm.slane %v1266_v40, %v2276_v3  ;;  %1419 = vmatpush.msrb.mxu3 %v1403_v35  ;;  %v1399_v38 = vld [vmem:[%s2211_s18 + $0x18] sm:$0xff]  ;;  %v1398_v40 = vld [vmem:[%s2211_s18 + $0x10] sm:$0xff] }
 0x4df   : > { %v1254_v43 = vsel %vm678_vm7, %v1253_v37, %v1236_v10  ;;  %v1400_v37 = vld [vmem:[%s2211_s18 + $0x20] sm:$0xff] }
 0x4e0   : > { %v1260_v44 = vperm.slane %v1254_v43, %v2276_v3  ;;  %v1269_v45 = vrot.slane %v1264_v41, 4  ;;  %v1289_v46 = vperm.slane %v1285_v42, %v2271_v59  ;;  %v1397_v41 = vld [vmem:[%s2211_s18 + $0x8] sm:$0xff]  ;;  %v1396_v42 = vld [vmem:[%s2211_s18] sm:$0xff]  ;;  %v1447_v43 = vld [vmem:[%s2220_s11 + $0x78] sm:$0xff] }
 0x4e1   : > { %1449 = vmatpush.msrb.mxu0 %v1447_v43 }
 0x4e2   : > { %v1267_v48 = vrot.slane %v1260_v44, 4  ;;  %v1270_v49 = vsel %vm678_vm7, 0.0, %v1269_v45  ;;  %v1271_v50 = vsel %vm678_vm7, %v1269_v45, %v1260_v44  ;;  %v1302_v51 = vrot.slane %v1289_v46, 4  ;;  %v1446_v44 = vld [vmem:[%s2220_s11 + $0x70] sm:$0xff]  ;;  %v1445_v45 = vld [vmem:[%s2220_s11 + $0x68] sm:$0xff] }
 0x4e3   : > { %v1276_v52 = vrot.slane %v1270_v49, 4  ;;  %v1275_v53 = vperm.slane %v1271_v50, %v2271_v59  ;;  %v1307_v61 = vperm.slane %v1289_v46, %v2276_v3  ;;  %1450 = vmatpush.msrb.mxu0 %v1446_v44  ;;  %v1444_v49 = vld [vmem:[%s2220_s11 + $0x60] sm:$0xff] }
 0x4e4   : > { %v1268_v54 = vsel %vm678_vm7, 0.0, %v1267_v48  ;;  %v1303_v55 = vsel %vm678_vm7, 0.0, %v1302_v51  ;;  %v1443_v51 = vld [vmem:[%s2220_s11 + $0x58] sm:$0xff] }
 0x4e5   : > { %v1277_v56 = vsel %vm678_vm7, %v1276_v52, %v1268_v54  ;;  %v1292_v57 = vrot.slane %v1275_v53, 4  ;;  %v1311_v58 = vperm.slane %v1303_v55, %v2276_v3  ;;  %v1312_v11 = vrot.slane %v1307_v61, 4  ;;  %1451 = vmatpush.msrb.mxu0 %v1445_v45  ;;  %v1442_v52 = vld [vmem:[%s2220_s11 + $0x50] sm:$0xff]  ;;  %v1440_v54 = vld [vmem:[%s2220_s11 + $0x40] sm:$0xff] }
 0x4e6   : > { %v1281_v60 = vperm.slane %v1277_v56, %v2271_v59  ;;  %v1439_v56 = vld [vmem:[%s2220_s11 + $0x38] sm:$0xff] }
 0x4e7   : > { %v1316_v2 = vrot.slane %v1311_v58, 4  ;;  %1452 = vmatpush.msrb.mxu0 %v1444_v49 }
 0x4e8   : > { %v1293_v62 = vsel %vm678_vm7, %v1281_v60, %v1292_v57  ;;  %v1290_v63 = vrot.slane %v1281_v60, 4 }
 0x4e9   : > { %v1301_v0 = vperm.slane %v1293_v62, %v2276_v3  ;;  %1453 = vmatpush.msrb.mxu0 %v1443_v51 }
 0x4ea   : > { %v1291_v4 = vsel %vm678_vm7, %v1290_v63, %v1275_v53  ;;  %v1441_v53 = vld [vmem:[%s2220_s11 + $0x48] sm:$0xff]  ;;  %v1436_v63 = vld [vmem:[%s2220_s11 + $0x20] sm:$0xff] }
 0x4eb   : > { %v1317_v5 = vsel %vm678_vm7, %v1316_v2, %v1301_v0  ;;  %v1318_v7 = vrot.slane %v1301_v0, 4  ;;  %v1297_v8 = vperm.slane %v1291_v4, %v2276_v3  ;;  %v1344_v3 = vld [vmem:[%s2206_s14 + $0x38] sm:$0xff]  ;;  %1454 = vmatpush.msrb.mxu0 %v1442_v52 }
 0x4ec   : > { %1325 = vrot.lane.b32.xlu0 %v1317_v5, %s2031_s23  ;;  %1357 = vmatpush.msrb.mxu2 %v1344_v3  ;;  %v1435_v2 = vld [vmem:[%s2220_s11 + $0x18] sm:$0xff]  ;;  %v1392_v5 = vperm.slane %v2257_v39, 2  ;;  %v1432_v3 = vld [vmem:[%s2220_s11] sm:$0xff] }
 0x4ed   : > { %v1319_v59 = vsel %vm678_vm7, %v1311_v58, %v1318_v7  ;;  %v1314_v13 = vrot.slane %v1297_v8, 4  ;;  %v1313_v14 = vsel %vm678_vm7, %v1312_v11, %v1297_v8  ;;  %1455 = vmatpush.msrb.mxu0 %v1441_v53  ;;  %v1438_v58 = vld [vmem:[%s2220_s11 + $0x30] sm:$0xff]  ;;  %v1394_v11 = vperm.slane %v2257_v39, 3 }
 0x4ee   : > { %1329 = vrot.lane.b32.xlu1 %v1319_v59, %s2032_s25  ;;  %1358 = vmatpush.msrb.mxu2 %v1343_v16  ;;  %v1897_v16 = vld [vmem:[%s545_s27] ss:$0 sm:$0xff] }
 0x4ef   : > { %v1315_v15 = vsel %vm678_vm7, %v1307_v61, %v1314_v13  ;;  %1456 = vmatpush.msrb.mxu0 %v1440_v54  ;;  %v1437_v61 = vld [vmem:[%s2220_s11 + $0x28] sm:$0xff] }
 0x4f0   : > { %1321 = vrot.lane.b32.xlu2 %v1315_v15, %s2033_s28  ;;  %1359 = vmatpush.msrb.mxu2 %v1342_v17  ;;  %v1433_v15 = vld [vmem:[%s2220_s11 + $0x8] sm:$0xff] }
 0x4f1   : > { %1457 = vmatpush.msrb.mxu0 %v1439_v56 }
 0x4f2   : > { %1360 = vmatpush.msrb.mxu2 %v1341_v18 }
 0x4f3   : > { %1458 = vmatpush.msrb.mxu0 %v1438_v58 }
 0x4f4   : > { %1361 = vmatpush.msrb.mxu2 %v1340_v19 }
 0x4f5   : > { %1459 = vmatpush.msrb.mxu0 %v1437_v61 }
 0x4f6   : > { %1362 = vmatpush.msrb.mxu2 %v1339_v20  ;;  %v1448_v20 = vperm.slane %v2257_v39, 5 }
 0x4f7   : > { %1460 = vmatpush.msrb.mxu0 %v1436_v63 }
 0x4f8   : > { %1363 = vmatpush.msrb.mxu2 %v1338_v21 }
 0x4f9   : > { %1461 = vmatpush.msrb.mxu0 %v1435_v2 }
 0x4fa   : > { %1364 = vmatpush.msrb.mxu2 %v1337_v22 }
 0x54a   : > { %v1322_v23 = vpop.permute.xlu2 %1321 }
 0x54b   : > { %v1332_v24 = vsel %vm973_vm8, %v1313_v14, %v1322_v23  ;;  %v1434_v14 = vld [vmem:[%s2220_s11 + $0x10] sm:$0xff] }
 0x54c   : > { %1462 = vmatpush.msrb.mxu0 %v1434_v14 }
 0x54e   : > { %1463 = vmatpush.msrb.mxu0 %v1433_v15 }
 0x550   : > { %1464 = vmatpush.msrb.mxu0 %v1432_v3 }
 0x55e   : > { %v1326_v47 = vpop.permute.xlu0 %1325 }
 0x55f   : > { %v1334_v25 = vsel %vm1333_vm12, %v1332_v24, %v1326_v47 }
 0x560   : > { %v1330_v26 = vpop.permute.xlu1 %1329 }
 0x561   : > { %v1336_v27 = vsel %vm1335_vm13, %v1334_v25, %v1330_v26 }
 0x562   : > { %1803 = vmatmul.msk.f32.vlgmr.msrb.gmra.mxu2 %vm623_vm6, %v1336_v27 }
 0x5e5   : > { %v1366_v6 = vpop.f32.mrf.mxu2 }
 0x5e6   : > { %v1367_v29 = vadd.f32 %v1366_v6, %v1345_v28 }
 0x5e8   : > { %v2450_v30 = vadd.f32 %v1367_v29, %v2230_v1  ;;  %v1402_v1 = vld [vmem:[%s2211_s18 + $0x30] sm:$0xff] }
 0x5e9   : > { %1420 = vmatpush.msrb.mxu3 %v1402_v1 }
 0x5ea   : > { %v1370_v31 = vsel %vm567_vm1, %v2450_v30, 0.0 }
 0x5eb   : > { %1371 = vadd.xlane.f32.xlu0 %v1370_v31  ;;  %1421 = vmatpush.msrb.mxu3 %v1401_v36 }
 0x5ed   : > { %1422 = vmatpush.msrb.mxu3 %v1400_v37 }
 0x5ef   : > { %1423 = vmatpush.msrb.mxu3 %v1399_v38 }
 0x5f1   : > { %1424 = vmatpush.msrb.mxu3 %v1398_v40 }
 0x5f3   : > { %1425 = vmatpush.msrb.mxu3 %v1397_v41 }
 0x5f5   : > { %1426 = vmatpush.msrb.mxu3 %v1396_v42 }
 0x65e   : > { %v1372_v10 = vpop.xlane.xlu0 %1371 }
 0x65f   : > { %v1373_v12 = vmul.f32 %v1372_v10, %v2234_v9 }
 0x661   : > { %v1374_v32 = vsub.f32 %v2450_v30, %v1373_v12 }
 0x663   : > { %v1375_v33 = vmul.f32 %v1374_v32, %v1374_v32 }
 0x665   : > { %v1376_v34 = vsel %vm567_vm1, %v1375_v33, 0.0 }
 0x666   : > { %1377 = vadd.xlane.f32.xlu2 %v1376_v34 }
 0x6d9   : > { %v1378_v46 = vpop.xlane.xlu2 %1377 }
 0x6da   : > { %v1379_v48 = vmul.f32 %v1378_v46, %v2234_v9 }
 0x6dc   : > { %v1380_v50 = vadd.f32 1e-05, %v1379_v48 }
 0x6de   : > { %1918 = vrsqrt.f32 %v1380_v50  ;;  %vm1387_vm15 = vweird.f32 %v1380_v50 }
 0x6e4   : > { %v1919_v55 = vpop.eup %1918 }
 0x6e5   : > { %v1382_v57 = vmul.f32 %v1919_v55, %v1380_v50  ;;  %vm1388_vm14 = vweird.f32 %v1919_v55 }
 0x6e6   : > { %vm1389_vm0 = vmor %vm1387_vm15, %vm1388_vm14 }
 0x6e7   : > { %v1383_v60 = vmul.f32 %v1919_v55, %v1382_v57 }
 0x6e9   : > { %v1384_v62 = vmul.f32 0.5, %v1383_v60 }
 0x6eb   : > { %v1385_v0 = vsub.f32 1.5, %v1384_v62 }
 0x6ed   : > { %v1386_v4 = vmul.f32 %v1919_v55, %v1385_v0 }
 0x6ef   : > { %v1390_v7 = vsel %vm1389_vm0, %v1919_v55, %v1386_v4 }
 0x6f0   : > { %v1391_v8 = vmul.f32 %v1390_v7, %v1374_v32 }
 0x6f2   : > { %v1393_v59 = vmul.f32 %v1392_v5, %v1391_v8 }
 0x6f4   : > { %v1395_v13 = vadd.f32 %v1394_v11, %v1393_v59 }
 0x6f6   : > { %1804 = vmatmul.msk.f32.vlgmr.msrb.gmra.mxu3 %vm623_vm6, %v1395_v13 }
 0x779   : > { %v1428_v17 = vpop.f32.mrf.mxu3 }
 0x77a   : > { %v1429_v18 = vadd.f32 %v1897_v16, %v1428_v17 }
 0x77c   : > { %v1431_v19 = vmax.f32 %v1429_v18, 0.0 }
 0x77e   : > { %1465 = vmatmul.f32.vlgmr.msrb.gmra.mxu0 %v1431_v19 }
 0x7fb   : > { %v1466_v21 = vpop.f32.mrf.mxu0 }
 0x7fc   : > { %v1467_v22 = vadd.f32 %v1466_v21, %v1448_v20  ;;  %1474 = sbr.rel (%p1805_p1) target bundleno = 2725 (0xaa5), region = 72 }
 0x7fe   : > { %v1469_v23 = vadd.f32 %v1467_v22, %v2450_v30 }
 0x800   : > { %1470 = vst.msk [vmem:[#allocation2] sm:$0x1f] %vm567_vm1, %v1469_v23 }
 0x801   : > { %v1477_v24 = vsel %vm567_vm1, %v1469_v23, 0.0  ;;  %v2034_v12 = vmov 5.0   ;;  %v1920_v1 = vld [vmem:[%s2599_s8] ss:$0 sm:$0xff]  ;;  %v1921_v38 = vld [vmem:[%s2599_s8 + $0x1] ss:$0 sm:$0xff] }
 0x802   : > { %1478 = vadd.xlane.f32.xlu0 %v1477_v24  ;;  %v1548_v63 = vld [vmem:[%s2642_s21 + $0x38] sm:$0xff]  ;;  %v1547_v0 = vld [vmem:[%s2643_s16 + $0x30] sm:$0xff]  ;;  %v1546_v2 = vld [vmem:[%s2643_s16 + $0x28] sm:$0xff]  ;;  %vm1573_vm9 = vcmask 24576   ;;  %s2645_s21 = scalar_lea.vmem %s2603_s12, %s2177_s30 }
 0x803   : > { %1561 = vmatpush.msra.mxu0 %v1548_v63  ;;  %v1545_v4 = vld [vmem:[%s2643_s16 + $0x20] sm:$0xff]  ;;  %v1544_v5 = vld [vmem:[%s2643_s16 + $0x18] sm:$0xff]  ;;  %v1543_v7 = vld [vmem:[%s2643_s16 + $0x10] sm:$0xff] }
 0x804   : > { %v1542_v8 = vld [vmem:[%s2643_s16 + $0x8] sm:$0xff]  ;;  %v1541_v11 = vld [vmem:[%s2643_s16] sm:$0xff] }
 0x805   : > { %1562 = vmatpush.msra.mxu0 %v1547_v0 }
 0x807   : > { %1563 = vmatpush.msra.mxu0 %v1546_v2 }
 0x809   : > { %1564 = vmatpush.msra.mxu0 %v1545_v4 }
 0x80b   : > { %1565 = vmatpush.msra.mxu0 %v1544_v5 }
 0x80d   : > { %1566 = vmatpush.msra.mxu0 %v1543_v7 }
 0x80f   : > { %1567 = vmatpush.msra.mxu0 %v1542_v8 }
 0x811   : > { %1568 = vmatpush.msra.mxu0 %v1541_v11 }
 0x875   : > { %v1479_v47 = vpop.xlane.xlu0 %1478 }
 0x876   : > { %v1480_v25 = vmul.f32 %v1479_v47, %v2234_v9 }
 0x878   : > { %v1481_v26 = vsub.f32 %v1469_v23, %v1480_v25 }
 0x87a   : > { %v1482_v27 = vmul.f32 %v1481_v26, %v1481_v26 }
 0x87c   : > { %v1483_v28 = vsel %vm567_vm1, %v1482_v27, 0.0 }
 0x87d   : > { %1484 = vadd.xlane.f32.xlu0 %v1483_v28 }
 0x8f0   : > { %v1485_v39 = vpop.xlane.xlu0 %1484 }
 0x8f1   : > { %v1486_v6 = vmul.f32 %v1485_v39, %v2234_v9 }
 0x8f3   : > { %v1487_v29 = vadd.f32 1e-05, %v1486_v6 }
 0x8f5   : > { %1922 = vrsqrt.f32 %v1487_v29  ;;  %vm1494_vm3 = vweird.f32 %v1487_v29 }
 0x8f6   : > { %1924 = vrcp.f32 %v2034_v12 }
 0x8fb   : > { %v1923_v30 = vpop.eup %1922 }
 0x8fc   : > { %v1489_v31 = vmul.f32 %v1923_v30, %v1487_v29  ;;  %vm1495_vm2 = vweird.f32 %v1923_v30  ;;  %v1925_v34 = vpop.eup %1924 }
 0x8fd   : > { %vm1496_vm4 = vmor %vm1494_vm3, %vm1495_vm2  ;;  %v1512_v40 = vmul.f32 5.0, %v1925_v34  ;;  %vm1516_vm5 = vweird.f32 %v1925_v34 }
 0x8fe   : > { %v1490_v10 = vmul.f32 %v1923_v30, %v1489_v31 }
 0x8ff   : > { %v1513_v43 = vsub.f32 1.0, %v1512_v40 }
 0x900   : > { %v1491_v32 = vmul.f32 0.5, %v1490_v10 }
 0x901   : > { %v1514_v46 = vmul.f32 %v1925_v34, %v1513_v43 }
 0x902   : > { %v1492_v33 = vsub.f32 1.5, %v1491_v32 }
 0x903   : > { %v1515_v50 = vadd.f32 %v1925_v34, %v1514_v46 }
 0x904   : > { %v1493_v35 = vmul.f32 %v1923_v30, %v1492_v33 }
 0x905   : > { %v1517_v53 = vsel %vm1516_vm5, %v1925_v34, %v1515_v50 }
 0x906   : > { %v1497_v36 = vsel %vm1496_vm4, %v1923_v30, %v1493_v35 }
 0x907   : > { %v1498_v37 = vmul.f32 %v1497_v36, %v1481_v26 }
 0x909   : > { %v1500_v41 = vmul.f32 %v1920_v1, %v1498_v37 }
 0x90b   : > { %v1502_v42 = vadd.f32 %v1921_v38, %v1500_v41 }
 0x90d   : > { %v1504_v44 = vsel %vm567_vm1, %v1502_v42, 0.0  ;;  %1503 = vst.msk [vmem:[%s514_s13] sm:$0x1f] %vm567_vm1, %v1502_v42 }
 0x90e   : > { %v1505_v45 = vrot.slane %v1504_v44, 4 }
 0x910   : > { %v1506_v48 = vadd.f32 %v1505_v45, %v1504_v44 }
 0x912   : > { %v1507_v49 = vrot.slane %v1506_v48, 2 }
 0x914   : > { %v1508_v51 = vadd.f32 %v1507_v49, %v1506_v48 }
 0x916   : > { %v1509_v52 = vrot.slane %v1508_v51, 1 }
 0x918   : > { %v1510_v54 = vadd.f32 %v1509_v52, %v1508_v51 }
 0x91a   : > { %v1518_v55 = vmul.f32 %v1517_v53, %v1510_v54 }
 0x91c   : > { %v1519_v56 = vsel %vm623_vm6, %v1518_v55, 0.0 }
 0x91d   : > { %1520 = vadd.xlane.f32.xlu1 %v1519_v56 }
 0x990   : > { %v1521_v57 = vpop.xlane.xlu1 %1520 }
 0x991   : > { %v1522_v58 = vmul.f32 %v1521_v57, %v2234_v9 }
 0x993   : > { %v1523_v60 = vsub.f32 %v1518_v55, %v1522_v58 }
 0x995   : > { %v1524_v61 = vmul.f32 %v1523_v60, %v1523_v60 }
 0x997   : > { %v1525_v62 = vsel %vm623_vm6, %v1524_v61, 0.0 }
 0x998   : > { %1526 = vadd.xlane.f32.xlu1 %v1525_v62 }
 0xa0b   : > { %v1527_v59 = vpop.xlane.xlu1 %1526 }
 0xa0c   : > { %v1528_v13 = vmul.f32 %v1527_v59, %v2234_v9  ;;  %v1549_v9 = vld [vmem:[%s2644_s26] sm:$0x1] }
 0xa0e   : > { %v1529_v14 = vadd.f32 1e-05, %v1528_v13 }
 0xa10   : > { %1926 = vrsqrt.f32 %v1529_v14  ;;  %vm1536_vm7 = vweird.f32 %v1529_v14 }
 0xa16   : > { %v1927_v15 = vpop.eup %1926 }
 0xa17   : > { %v1531_v3 = vmul.f32 %v1927_v15, %v1529_v14  ;;  %vm1537_vm1 = vweird.f32 %v1927_v15 }
 0xa18   : > { %vm1538_vm8 = vmor %vm1536_vm7, %vm1537_vm1 }
 0xa19   : > { %v1532_v16 = vmul.f32 %v1927_v15, %v1531_v3 }
 0xa1b   : > { %v1533_v17 = vmul.f32 0.5, %v1532_v16 }
 0xa1d   : > { %v1534_v18 = vsub.f32 1.5, %v1533_v17 }
 0xa1f   : > { %v1535_v19 = vmul.f32 %v1927_v15, %v1534_v18 }
 0xa21   : > { %v1539_v20 = vsel %vm1538_vm8, %v1927_v15, %v1535_v19 }
 0xa22   : > { %v1540_v21 = vmul.f32 %v1539_v20, %v1523_v60 }
 0xa24   : > { %1806 = vmatmul.msk.f32.vlgmr.msra.gmra.mxu0 %vm623_vm6, %v1540_v21 }
 0xaa1   : > { %v1570_v22 = vpop.f32.mrf.mxu0 }
 0xaa2   : > { %v1571_v23 = vadd.f32 %v1570_v22, %v1549_v9 }
 0xaa4   : > { %1574 = vst.msk [vmem:[%s2645_s21] sm:$0x1] %vm1573_vm9, %v1571_v23 }
 0xaa5 PF: > { %s2646_s11 = sld [smem:[#allocation9_spill]]  ;;  %s1591_s23 = sshll.u32 %s514_s13, 4  ;;  %s1592_s23 = int_to_ptr.vmem [resolvable:$true] %s1591_s23 }
 0xaa6   : > { %s2647_s22 = sld [smem:[#allocation7_spill]] }
 0xaa7   : > { %s2649_s2 = sld [smem:[#allocation23_spill]] }
 0xaab   : > { %s1808_s9 = sshll.u32 %s2646_s11, 3 }
 0xaac   : > { %s2650_s28 = sand.u32 1, %s2647_s22  }
 0xaad   : > { %s1589_s10 = scalar_lea.hbm %s2649_s2, %s1808_s9  ;;  %s1576_s19 = scalar_lea.sflag [#allocation4], %s2650_s28 }
 0xaae   : > { %s1593_s25 = sshll.u32 %s1589_s10, 4  ;;  %s1948_s17 = scalar_lea.hbm %s2649_s2, 16  ;;  %s1594_s25 = int_to_ptr.hbm [resolvable:$true] %s1593_s25 }
 0xaaf   : > { %s1942_s14 = sshra.s32 %s1594_s25, 4  ;;  %s1943_s14 = int_to_ptr.hbm [resolvable:$true] %s1942_s14 }
 0xab0   : > { %s1944_s30 = scalar_lea.hbm %s1943_s14, 8  ;;  %p1949_p6 = scmp.lt.s32.totalorder %s1943_s14, %s2649_s2 }
 0xab1   : > { %p1945_p2 = scmp.ne.s32.totalorder %s1943_s14, %s1944_s30  ;;  %p1950_p7 = scmp.lt.s32.totalorder %s1948_s17, %s1944_s30 }
 0xab3   : > { %p1946_p4 = pnand %p1945_p2, %p2149_p3  ;;  %p1951_p8 = por %p1950_p7, %p1949_p6 }
 0xab5   : > { %p1947_p5 = pneg %p1946_p4 }
 0xab7   : > { %p1952_p10 = pnand %p1951_p8, %p1947_p5 }
 0xab9   : > { %1955 = shalt.err (!%p1952_p10)
}
 0xaba   : > { %1815 = dma.vmem_to_hbm [thread:$0]  (%p2149_p3), %s1592_s23, 128, %s1594_s25, %s1576_s19  }
 0xabb PF: > { %s2651_s29 = sld [smem:[#allocation12_spill]] }
 0xabc   : > { %s2652_s13 = sld [smem:[#allocation6_spill]] }
 0xac1   : > { %p1821_p11 = scmp.ge.s32.totalorder %s2651_s29, 2 }
 0xac2   : > { %s1608_s21 = sand.u32 1, %s2652_s13  }
 0xac3   : > { %p1818_p12 = pnand %p1821_p11, %p2159_p9  ;;  %s1609_s11 = scalar_lea.sflag [#allocation4], %s1608_s21 }
 0xac5   : > { %p1819_p13 = pneg %p1818_p12 }
 0xac7   : > { %1989 = dma.done.wait (%p1819_p13), %s1609_s11, 128  }
 0xac8   : > { %1991 = vsyncadd (%p1819_p13), %s1609_s11, 4294967168  ;;  %s26_s28 = sadd.s32 1, %s2651_s29   ;;  %s2654_s21 = sld [smem:[#allocation7_spill]] }
 0xac9   : > { %p23_p0 = scmp.ge.s32.totalorder %s26_s28, 6   ;;  %s2655_s22 = sld [smem:[#allocation8_spill]] }
 0xaca   : > { %s2656_s23 = sld [smem:[#allocation17_spill]] }
 0xacb   : > { %s2657_s24 = sld [smem:[#allocation10_spill]]  ;;  %25 = sbr.rel (!%p23_p0) target bundleno = 12 (0xc), region = 140 }
 0xacc   : > { %s2658_s25 = sld [smem:[#allocation11_spill]] }
 0xacd   : > { %s2659_s26 = sld [smem:[#allocation13_spill]] }
 0xace   : > { %s2660_s27 = sld [smem:[#allocation15_spill]] }
 0xad0   :  { %1621 = vsyncpa [#allocation4], 1 }
 0xad1   :  { %1623 = vsyncpa [#allocation4 + $0x1], 1 }

</bundles_post_ra>
